<compile_context>
chip_gen: v5e
topology: v5e:2x2
jax: 0.10.0
libtpu: 0.0.40
codegen_flags: <defaults>
</compile_context>

<pallas_src>
import functools

import jax
import jax.numpy as jnp
from jax.experimental import pallas as pl
from jax.experimental.pallas import tpu as pltpu


# ----------------------------------------------------------------------------
# helpers
# ----------------------------------------------------------------------------
def _gelu_exact(x):
    # nn.GELU() default = exact erf formulation: 0.5*x*(1+erf(x/sqrt(2)))
    # TODO(synk): on v5e (no bf16 VPU) a tanh-approx GELU routed to the EUP
    #             would relieve the VALU; kept exact to match nn.GELU().
    return 0.5 * x * (1.0 + jax.lax.erf(x * jnp.float32(0.7071067811865476)))


_VMEM_LIMIT = 48 * 1024 * 1024  # below v7x's 64 MiB physical, above 32 MiB default


# ----------------------------------------------------------------------------
# fused matmul -> GELU -> BN  (patch embedding), row-tiled over M
# ----------------------------------------------------------------------------
def _matmul_gelu_bn_kernel(x_ref, w_ref, b_ref, scale_ref, shift_ref, o_ref):
    # x: [tm, K] bf16, w: [K, N] bf16, b/scale/shift: [1, N] f32 -> o: [tm, N]
    acc = jnp.dot(x_ref[...], w_ref[...], preferred_element_type=jnp.float32)
    acc = acc + b_ref[...]
    acc = _gelu_exact(acc)
    o_ref[...] = (acc * scale_ref[...] + shift_ref[...]).astype(o_ref.dtype)


def matmul_gelu_bn(x, w, b, scale, shift, *, tm=512, out_dtype=jnp.float32):
    """Fused (x @ w + b) -> GELU -> BN(scale, shift), tiled over rows of x."""
    M, K = x.shape
    N = w.shape[1]
    tm = min(tm, M)  # tm=512 fits v7x's 64 MiB VMEM budget; full M for small inputs
    return pl.pallas_call(
        _matmul_gelu_bn_kernel,
        out_shape=jax.ShapeDtypeStruct((M, N), out_dtype),
        grid=(pl.cdiv(M, tm),),
        in_specs=[
            pl.BlockSpec((tm, K), lambda i: (i, 0)),
            pl.BlockSpec((K, N), lambda i: (0, 0)),
            pl.BlockSpec((1, N), lambda i: (0, 0)),
            pl.BlockSpec((1, N), lambda i: (0, 0)),
            pl.BlockSpec((1, N), lambda i: (0, 0)),
        ],
        out_specs=pl.BlockSpec((tm, N), lambda i: (i, 0)),
        compiler_params=pltpu.CompilerParams(
            dimension_semantics=("parallel",),
            vmem_limit_bytes=_VMEM_LIMIT),
    )(x, w, b, scale, shift)


# ----------------------------------------------------------------------------
# fused ConvMixer block:
#   Residual(depthwise conv -> GELU -> BN) -> 1x1 conv -> GELU -> BN (+pool)
# ----------------------------------------------------------------------------
def _mixer_block_kernel(x_ref, dww_ref, dwb_ref, dws_ref, dwh_ref,
                        pww_ref, pwb_ref, pws_ref, pwh_ref,
                        out_ref, pool_ref, xpad_s, yflat_s,
                        *, kh, kw, H, W, pt, pleft, inv_hw):
    C = x_ref.shape[-1]
    x = x_ref[...].astype(jnp.float32)                      # (1, H, W, C)

    # 'same' zero padding built directly in VMEM scratch (no padded HBM copy,
    # and no second HBM read of x for the residual).
    xpad_s[...] = jnp.zeros_like(xpad_s)
    xpad_s[:, pt:pt + H, pleft:pleft + W, :] = x
    xp = xpad_s[...]

    # depthwise kxk conv as shift-and-MAC over the window (f32 on the VPU).
    # TODO(synk): W-axis tap slices are sublane-unaligned; a pltpu.roll-based
    #             shift (XLU slot) would remove the per-tap relayout copies.
    dww = dww_ref[...]                                      # (kh*kw, C)
    acc = jnp.zeros((1, H, W, C), jnp.float32)
    for dy in range(kh):
        for dx in range(kw):
            tap = dww[dy * kw + dx].reshape(1, 1, 1, C)
            acc = acc + xp[:, dy:dy + H, dx:dx + W, :] * tap
    acc = acc + dwb_ref[...].reshape(1, 1, 1, C)
    y = _gelu_exact(acc)
    y = y * dws_ref[...].reshape(1, 1, 1, C) + dwh_ref[...].reshape(1, 1, 1, C)
    y = y + x                                               # residual (from VMEM)

    # Explicit relayout (1,H,W,C) -> (H*W, C) through a VMEM scratch so the
    # pointwise conv runs as one big lane-dense matmul (avoids relying on a
    # Mosaic reshape across a non-8-aligned W axis).
    for h in range(H):
        yflat_s[h * W:(h + 1) * W, :] = y[0, h]
    yf = yflat_s[...]

    # pointwise 1x1 conv == channel matmul on the MXU: bf16 operands, f32 accum
    z = jnp.dot(yf.astype(jnp.bfloat16), pww_ref[...],
                preferred_element_type=jnp.float32)         # (H*W, C)
    z = z + pwb_ref[...]
    z = _gelu_exact(z)
    z = z * pws_ref[...] + pwh_ref[...]

    out_ref[0] = z.astype(out_ref.dtype)
    # fused global average pool (consumed by the linear head after last block)
    pool_ref[0] = (jnp.sum(z, axis=0, keepdims=True) * inv_hw).astype(pool_ref.dtype)


def mixer_block(x, dww, dwb, dws, dwh, pww, pwb, pws, pwh, *, kernel_size):
    """One ConvMixer block, fully fused, grid over batch (parallel across TCs).

    Returns (activation[(B, H*W, C), bf16], pooled_mean[(B, 1, C), f32]).
    """
    B, H, W, C = x.shape
    kh = kw = kernel_size
    pt = (kh - 1) // 2          # PyTorch padding='same' (odd kernel: symmetric)
    pleft = (kw - 1) // 2
    Hp, Wp = H + kh - 1, W + kw - 1
    HW = H * W
    # TODO(synk): for very large spatial extents, add an H-slab grid axis with
    #             a (kh-1) halo; per-image planes easily fit VMEM at ConvMixer
    #             sizes so batch-only tiling is used here.
    kern = functools.partial(_mixer_block_kernel, kh=kh, kw=kw, H=H, W=W,
                             pt=pt, pleft=pleft, inv_hw=1.0 / float(HW))
    out, pool = pl.pallas_call(
        kern,
        out_shape=(jax.ShapeDtypeStruct((B, HW, C), x.dtype),
                   jax.ShapeDtypeStruct((B, 1, C), jnp.float32)),
        grid=(B,),
        in_specs=[
            pl.BlockSpec((1, H, W, C), lambda b: (b, 0, 0, 0)),
            pl.BlockSpec((kh * kw, C), lambda b: (0, 0)),
            pl.BlockSpec((1, C), lambda b: (0, 0)),
            pl.BlockSpec((1, C), lambda b: (0, 0)),
            pl.BlockSpec((1, C), lambda b: (0, 0)),
            pl.BlockSpec((C, C), lambda b: (0, 0)),
            pl.BlockSpec((1, C), lambda b: (0, 0)),
            pl.BlockSpec((1, C), lambda b: (0, 0)),
            pl.BlockSpec((1, C), lambda b: (0, 0)),
        ],
        out_specs=[pl.BlockSpec((1, HW, C), lambda b: (b, 0, 0)),
                   pl.BlockSpec((1, 1, C), lambda b: (b, 0, 0))],
        scratch_shapes=[pltpu.VMEM((1, Hp, Wp, C), jnp.float32),
                        pltpu.VMEM((HW, C), jnp.float32)],
        compiler_params=pltpu.CompilerParams(
            dimension_semantics=("parallel",),
            vmem_limit_bytes=_VMEM_LIMIT),
    )(x, dww, dwb, dws, dwh, pww, pwb, pws, pwh)
    return out, pool


# ----------------------------------------------------------------------------
# parameter construction (deterministic, synthetic; BN folded to scale/shift)
# ----------------------------------------------------------------------------
def _bn_fold(key, c):
    k1, k2, k3, k4 = jax.random.split(key, 4)
    gamma = 1.0 + 0.1 * jax.random.normal(k1, (c,), jnp.float32)
    beta = 0.1 * jax.random.normal(k2, (c,), jnp.float32)
    running_mean = 0.1 * jax.random.normal(k3, (c,), jnp.float32)
    running_var = 0.5 + jax.random.uniform(k4, (c,), jnp.float32)
    eps = 1e-5
    scale = gamma / jnp.sqrt(running_var + eps)
    shift = beta - running_mean * scale
    return scale.reshape(1, c), shift.reshape(1, c)


def init_convmixer_params(key, dim, depth, kernel_size, patch_size, n_classes):
    keys = jax.random.split(key, 2 + depth)
    params = {}
    # patch embedding: Conv2d(3, dim, patch_size, stride=patch_size)
    kp = jax.random.split(keys[0], 3)
    K = 3 * patch_size * patch_size
    params["patch"] = {
        # MXU matmul weights are pre-cast to bf16 (accumulation stays f32)
        "w": (0.1 * jax.random.normal(kp[0], (K, dim), jnp.float32)).astype(jnp.bfloat16),
        "b": (0.05 * jax.random.normal(kp[1], (dim,), jnp.float32)).reshape(1, dim),
    }
    params["patch"]["scale"], params["patch"]["shift"] = _bn_fold(kp[2], dim)
    # mixer blocks
    params["blocks"] = []
    for d in range(depth):
        kb = jax.random.split(keys[1 + d], 6)
        blk = {
            "dw_w": 0.1 * jax.random.normal(kb[0], (kernel_size * kernel_size, dim),
                                            jnp.float32),
            "dw_b": (0.05 * jax.random.normal(kb[1], (dim,), jnp.float32)).reshape(1, dim),
            "pw_w": (0.1 * jax.random.normal(kb[3], (dim, dim), jnp.float32)).astype(jnp.bfloat16),
            "pw_b": (0.05 * jax.random.normal(kb[4], (dim,), jnp.float32)).reshape(1, dim),
        }
        blk["dw_scale"], blk["dw_shift"] = _bn_fold(kb[2], dim)
        blk["pw_scale"], blk["pw_shift"] = _bn_fold(kb[5], dim)
        params["blocks"].append(blk)
    # head: Linear(dim, n_classes)
    kh = jax.random.split(keys[1 + depth], 2)
    params["head"] = {
        "w": 0.1 * jax.random.normal(kh[0], (dim, n_classes), jnp.float32),
        "b": (0.05 * jax.random.normal(kh[1], (n_classes,), jnp.float32)).reshape(1, n_classes),
    }
    return params


# ----------------------------------------------------------------------------
# forward pass (glue in plain JAX, hot paths in Pallas)
# ----------------------------------------------------------------------------
def convmixer_forward(params, x_nchw, *, kernel_size, patch_size):
    N, Cin, H, W = x_nchw.shape
    assert Cin == 3 and H % patch_size == 0 and W % patch_size == 0
    Hp, Wp = H // patch_size, W // patch_size
    dim = params["patch"]["w"].shape[1]

    # --- patch embedding: im2col (glue) + row-tiled fused matmul/GELU/BN ---
    p = patch_size
    patches = x_nchw.reshape(N, 3, Hp, p, Wp, p)
    patches = patches.transpose(0, 2, 4, 1, 3, 5).reshape(N * Hp * Wp, 3 * p * p)
    emb = matmul_gelu_bn(patches.astype(jnp.bfloat16),
                         params["patch"]["w"], params["patch"]["b"],
                         params["patch"]["scale"], params["patch"]["shift"],
                         out_dtype=jnp.bfloat16)
    x = emb.reshape(N, Hp, Wp, dim)       # NHWC, bf16 activations between kernels

    # --- fused ConvMixer blocks (dw+GELU+BN+residual+pw+GELU+BN+pool) ---
    pool = None
    for blk in params["blocks"]:
        x_flat, pool = mixer_block(x, blk["dw_w"], blk["dw_b"],
                                   blk["dw_scale"], blk["dw_shift"],
                                   blk["pw_w"], blk["pw_b"],
                                   blk["pw_scale"], blk["pw_shift"],
                                   kernel_size=kernel_size)
        x = x_flat.reshape(N, Hp, Wp, dim)  # metadata-only reshape (contiguous)

    # --- head: pooled mean comes fused from the last block; tiny linear in JAX
    #     (a B x n_classes Pallas store would be <8% lane utilization) ---
    if pool is None:  # depth == 0 fallback
        pooled = jnp.mean(x.astype(jnp.float32), axis=(1, 2))
    else:
        pooled = pool[:, 0, :]                               # (N, dim) f32
    logits = pooled @ params["head"]["w"] + params["head"]["b"]
    return logits  # [N, n_classes]


# ----------------------------------------------------------------------------
# main
# ----------------------------------------------------------------------------
if __name__ == "__main__":
    dim = 128          # lane-aligned channel count (multiple of 128)
    depth = 2
    kernel_size = 3
    patch_size = 7
    n_classes = 10

    key = jax.random.PRNGKey(0)
    kparams, kx = jax.random.split(key)

    params = init_convmixer_params(kparams, dim, depth, kernel_size,
                                   patch_size, n_classes)
    # input matches PyTorch NCHW convention: [batch, 3, H, W]
    x = jax.random.normal(kx, (2, 3, 28, 28), jnp.float32)

    fwd = jax.jit(functools.partial(convmixer_forward,
                                    kernel_size=kernel_size,
                                    patch_size=patch_size))
    out = fwd(params, x)
    out = jax.block_until_ready(out)
    assert out.shape == (2, n_classes)
    print("KERNEL_OK")
</pallas_src>

<mosaic_0001>
module attributes {stable_mosaic.version = 11 : i64} {
  func.func @_matmul_gelu_bn_kernel(%arg0: i32, %arg1: memref<32x147xbf16, #tpu.memory_space<vmem>>, %arg2: memref<147x128xbf16, #tpu.memory_space<vmem>>, %arg3: memref<1x128xf32, #tpu.memory_space<vmem>>, %arg4: memref<1x128xf32, #tpu.memory_space<vmem>>, %arg5: memref<1x128xf32, #tpu.memory_space<vmem>>, %arg6: memref<32x128xbf16, #tpu.memory_space<vmem>>) attributes {dimension_semantics = [#tpu.dimension_semantics<parallel>], iteration_bounds = array<i64: 1>, scalar_prefetch = 0 : i64, scratch_operands = 0 : i64, tpu.core_type = #tpu.core_type<tc>, window_params = [{transform_indices = @transform_0, window_bounds = array<i64: 32, 147>}, {pipeline_mode = #tpu.pipeline_mode<synchronous>, transform_indices = @transform_1, window_bounds = array<i64: 147, 128>}, {pipeline_mode = #tpu.pipeline_mode<synchronous>, transform_indices = @transform_2, window_bounds = array<i64: 1, 128>}, {pipeline_mode = #tpu.pipeline_mode<synchronous>, transform_indices = @transform_3, window_bounds = array<i64: 1, 128>}, {pipeline_mode = #tpu.pipeline_mode<synchronous>, transform_indices = @transform_4, window_bounds = array<i64: 1, 128>}, {transform_indices = @transform_5, window_bounds = array<i64: 32, 128>}]} {
    %c0 = arith.constant 0 : index
    %c0_0 = arith.constant 0 : index
    %0 = vector.load %arg1[%c0, %c0_0] : memref<32x147xbf16, #tpu.memory_space<vmem>>, vector<32x147xbf16>
    %c0_1 = arith.constant 0 : index
    %c0_2 = arith.constant 0 : index
    %1 = vector.load %arg2[%c0_1, %c0_2] : memref<147x128xbf16, #tpu.memory_space<vmem>>, vector<147x128xbf16>
    %cst = arith.constant dense<0.000000e+00> : vector<32x128xf32>
    %2 = tpu.matmul %0, %1, %cst {dimension_numbers = #tpu.dot_dimension_numbers<[1], [0], [0], [1], [0, 0, 1, 1], [], []>} : vector<32x147xbf16>, vector<147x128xbf16>, vector<32x128xf32> -> vector<32x128xf32>
    %c0_3 = arith.constant 0 : index
    %c0_4 = arith.constant 0 : index
    %3 = vector.load %arg3[%c0_3, %c0_4] : memref<1x128xf32, #tpu.memory_space<vmem>>, vector<1x128xf32>
    %4 = vector.broadcast %3 : vector<1x128xf32> to vector<32x128xf32>
    %5 = arith.addf %2, %4 : vector<32x128xf32>
    %cst_5 = arith.constant 5.000000e-01 : f32
    %6 = vector.broadcast %cst_5 : f32 to vector<32x128xf32>
    %7 = arith.mulf %6, %5 : vector<32x128xf32>
    %cst_6 = arith.constant 0.707106769 : f32
    %8 = vector.broadcast %cst_6 : f32 to vector<32x128xf32>
    %9 = arith.mulf %5, %8 : vector<32x128xf32>
    %10 = math.erf %9 : vector<32x128xf32>
    %cst_7 = arith.constant 1.000000e+00 : f32
    %11 = vector.broadcast %cst_7 : f32 to vector<32x128xf32>
    %12 = arith.addf %11, %10 : vector<32x128xf32>
    %13 = arith.mulf %7, %12 : vector<32x128xf32>
    %c0_8 = arith.constant 0 : index
    %c0_9 = arith.constant 0 : index
    %14 = vector.load %arg4[%c0_8, %c0_9] : memref<1x128xf32, #tpu.memory_space<vmem>>, vector<1x128xf32>
    %15 = vector.broadcast %14 : vector<1x128xf32> to vector<32x128xf32>
    %16 = arith.mulf %13, %15 : vector<32x128xf32>
    %c0_10 = arith.constant 0 : index
    %c0_11 = arith.constant 0 : index
    %17 = vector.load %arg5[%c0_10, %c0_11] : memref<1x128xf32, #tpu.memory_space<vmem>>, vector<1x128xf32>
    %18 = vector.broadcast %17 : vector<1x128xf32> to vector<32x128xf32>
    %19 = arith.addf %16, %18 : vector<32x128xf32>
    %20 = arith.truncf %19 : vector<32x128xf32> to vector<32x128xbf16>
    %c0_12 = arith.constant 0 : index
    %c0_13 = arith.constant 0 : index
    %21 = vector.load %arg6[%c0_12, %c0_13] : memref<32x128xbf16, #tpu.memory_space<vmem>>, vector<32x128xbf16>
    tpu.vector_store %arg6[%c0_12, %c0_13], %20 {strides = array<i32>} : memref<32x128xbf16, #tpu.memory_space<vmem>>, vector<32x128xbf16>,
    return
  }
  func.func @transform_0(%arg0: i32) -> (i32, i32) {
    %c0_i32 = arith.constant 0 : i32
    %c0_i32_0 = arith.constant 0 : i32
    return %arg0, %c0_i32 : i32, i32
  }
  func.func @transform_1(%arg0: i32) -> (i32, i32) {
    %c0_i32 = arith.constant 0 : i32
    %c0_i32_0 = arith.constant 0 : i32
    %c0_i32_1 = arith.constant 0 : i32
    return %c0_i32, %c0_i32_0 : i32, i32
  }
  func.func @transform_2(%arg0: i32) -> (i32, i32) {
    %c0_i32 = arith.constant 0 : i32
    %c0_i32_0 = arith.constant 0 : i32
    %c0_i32_1 = arith.constant 0 : i32
    return %c0_i32, %c0_i32_0 : i32, i32
  }
  func.func @transform_3(%arg0: i32) -> (i32, i32) {
    %c0_i32 = arith.constant 0 : i32
    %c0_i32_0 = arith.constant 0 : i32
    %c0_i32_1 = arith.constant 0 : i32
    return %c0_i32, %c0_i32_0 : i32, i32
  }
  func.func @transform_4(%arg0: i32) -> (i32, i32) {
    %c0_i32 = arith.constant 0 : i32
    %c0_i32_0 = arith.constant 0 : i32
    %c0_i32_1 = arith.constant 0 : i32
    return %c0_i32, %c0_i32_0 : i32, i32
  }
  func.func @transform_5(%arg0: i32) -> (i32, i32) {
    %c0_i32 = arith.constant 0 : i32
    %c0_i32_0 = arith.constant 0 : i32
    return %arg0, %c0_i32 : i32, i32
  }
}

module attributes {stable_mosaic.version = 11 : i64} {
  func.func @_mixer_block_kernel(%arg0: i32, %arg1: memref<1x4x4x128xbf16, #tpu.memory_space<vmem>>, %arg2: memref<9x128xf32, #tpu.memory_space<vmem>>, %arg3: memref<1x128xf32, #tpu.memory_space<vmem>>, %arg4: memref<1x128xf32, #tpu.memory_space<vmem>>, %arg5: memref<1x128xf32, #tpu.memory_space<vmem>>, %arg6: memref<128x128xbf16, #tpu.memory_space<vmem>>, %arg7: memref<1x128xf32, #tpu.memory_space<vmem>>, %arg8: memref<1x128xf32, #tpu.memory_space<vmem>>, %arg9: memref<1x128xf32, #tpu.memory_space<vmem>>, %arg10: memref<1x16x128xbf16, #tpu.memory_space<vmem>>, %arg11: memref<1x1x128xf32, #tpu.memory_space<vmem>>, %arg12: memref<1x6x6x128xf32, #tpu.memory_space<vmem>>, %arg13: memref<16x128xf32, #tpu.memory_space<vmem>>) attributes {dimension_semantics = [#tpu.dimension_semantics<parallel>], iteration_bounds = array<i64: 2>, scalar_prefetch = 0 : i64, scratch_operands = 2 : i64, tpu.core_type = #tpu.core_type<tc>, window_params = [{transform_indices = @transform_0, window_bounds = array<i64: 1, 4, 4, 128>}, {pipeline_mode = #tpu.pipeline_mode<synchronous>, transform_indices = @transform_1, window_bounds = array<i64: 9, 128>}, {pipeline_mode = #tpu.pipeline_mode<synchronous>, transform_indices = @transform_2, window_bounds = array<i64: 1, 128>}, {pipeline_mode = #tpu.pipeline_mode<synchronous>, transform_indices = @transform_3, window_bounds = array<i64: 1, 128>}, {pipeline_mode = #tpu.pipeline_mode<synchronous>, transform_indices = @transform_4, window_bounds = array<i64: 1, 128>}, {pipeline_mode = #tpu.pipeline_mode<synchronous>, transform_indices = @transform_5, window_bounds = array<i64: 128, 128>}, {pipeline_mode = #tpu.pipeline_mode<synchronous>, transform_indices = @transform_6, window_bounds = array<i64: 1, 128>}, {pipeline_mode = #tpu.pipeline_mode<synchronous>, transform_indices = @transform_7, window_bounds = array<i64: 1, 128>}, {pipeline_mode = #tpu.pipeline_mode<synchronous>, transform_indices = @transform_8, window_bounds = array<i64: 1, 128>}, {transform_indices = @transform_9, window_bounds = array<i64: 1, 16, 128>}, {transform_indices = @transform_10, window_bounds = array<i64: 1, 1, 128>}]} {
    %c0 = arith.constant 0 : index
    %c0_0 = arith.constant 0 : index
    %c0_1 = arith.constant 0 : index
    %c0_2 = arith.constant 0 : index
    %0 = vector.load %arg1[%c0, %c0_0, %c0_1, %c0_2] : memref<1x4x4x128xbf16, #tpu.memory_space<vmem>>, vector<1x4x4x128xbf16>
    %1 = arith.extf %0 : vector<1x4x4x128xbf16> to vector<1x4x4x128xf32>
    %cst = arith.constant 0.000000e+00 : f32
    %2 = vector.broadcast %cst : f32 to vector<1x6x6x128xf32>
    %c0_3 = arith.constant 0 : index
    %c0_4 = arith.constant 0 : index
    %c0_5 = arith.constant 0 : index
    %c0_6 = arith.constant 0 : index
    %3 = vector.load %arg12[%c0_3, %c0_4, %c0_5, %c0_6] : memref<1x6x6x128xf32, #tpu.memory_space<vmem>>, vector<1x6x6x128xf32>
    tpu.vector_store %arg12[%c0_3, %c0_4, %c0_5, %c0_6], %2 {strides = array<i32>} : memref<1x6x6x128xf32, #tpu.memory_space<vmem>>, vector<1x6x6x128xf32>,
    %c0_7 = arith.constant 0 : index
    %c1 = arith.constant 1 : index
    %c1_8 = arith.constant 1 : index
    %c0_9 = arith.constant 0 : index
    %4 = vector.load %arg12[%c0_7, %c1, %c1_8, %c0_9] : memref<1x6x6x128xf32, #tpu.memory_space<vmem>>, vector<1x4x4x128xf32>
    tpu.vector_store %arg12[%c0_7, %c1, %c1_8, %c0_9], %1 {strides = array<i32>} : memref<1x6x6x128xf32, #tpu.memory_space<vmem>>, vector<1x4x4x128xf32>,
    %c0_10 = arith.constant 0 : index
    %c0_11 = arith.constant 0 : index
    %c0_12 = arith.constant 0 : index
    %c0_13 = arith.constant 0 : index
    %5 = vector.load %arg12[%c0_10, %c0_11, %c0_12, %c0_13] : memref<1x6x6x128xf32, #tpu.memory_space<vmem>>, vector<1x6x6x128xf32>
    %c0_14 = arith.constant 0 : index
    %c0_15 = arith.constant 0 : index
    %6 = vector.load %arg2[%c0_14, %c0_15] : memref<9x128xf32, #tpu.memory_space<vmem>>, vector<9x128xf32>
    %cst_16 = arith.constant 0.000000e+00 : f32
    %7 = vector.broadcast %cst_16 : f32 to vector<1x4x4x128xf32>
    %8 = vector.extract_strided_slice %6 {offsets = [0, 0], sizes = [1, 128], strides = [1, 1]} : vector<9x128xf32> to vector<1x128xf32>
    %9 = vector.shape_cast %8 : vector<1x128xf32> to vector<128xf32>
    %10 = vector.shape_cast %9 : vector<128xf32> to vector<1x1x1x128xf32>
    %11 = vector.extract_strided_slice %5 {offsets = [0, 0, 0, 0], sizes = [1, 4, 4, 128], strides = [1, 1, 1, 1]} : vector<1x6x6x128xf32> to vector<1x4x4x128xf32>
    %12 = vector.broadcast %10 : vector<1x1x1x128xf32> to vector<1x4x4x128xf32>
    %13 = arith.mulf %11, %12 : vector<1x4x4x128xf32>
    %14 = arith.addf %7, %13 : vector<1x4x4x128xf32>
    %15 = vector.extract_strided_slice %6 {offsets = [1, 0], sizes = [1, 128], strides = [1, 1]} : vector<9x128xf32> to vector<1x128xf32>
    %16 = vector.shape_cast %15 : vector<1x128xf32> to vector<128xf32>
    %17 = vector.shape_cast %16 : vector<128xf32> to vector<1x1x1x128xf32>
    %18 = vector.extract_strided_slice %5 {offsets = [0, 0, 1, 0], sizes = [1, 4, 4, 128], strides = [1, 1, 1, 1]} : vector<1x6x6x128xf32> to vector<1x4x4x128xf32>
    %19 = vector.broadcast %17 : vector<1x1x1x128xf32> to vector<1x4x4x128xf32>
    %20 = arith.mulf %18, %19 : vector<1x4x4x128xf32>
    %21 = arith.addf %14, %20 : vector<1x4x4x128xf32>
    %22 = vector.extract_strided_slice %6 {offsets = [2, 0], sizes = [1, 128], strides = [1, 1]} : vector<9x128xf32> to vector<1x128xf32>
    %23 = vector.shape_cast %22 : vector<1x128xf32> to vector<128xf32>
    %24 = vector.shape_cast %23 : vector<128xf32> to vector<1x1x1x128xf32>
    %25 = vector.extract_strided_slice %5 {offsets = [0, 0, 2, 0], sizes = [1, 4, 4, 128], strides = [1, 1, 1, 1]} : vector<1x6x6x128xf32> to vector<1x4x4x128xf32>
    %26 = vector.broadcast %24 : vector<1x1x1x128xf32> to vector<1x4x4x128xf32>
    %27 = arith.mulf %25, %26 : vector<1x4x4x128xf32>
    %28 = arith.addf %21, %27 : vector<1x4x4x128xf32>
    %29 = vector.extract_strided_slice %6 {offsets = [3, 0], sizes = [1, 128], strides = [1, 1]} : vector<9x128xf32> to vector<1x128xf32>
    %30 = vector.shape_cast %29 : vector<1x128xf32> to vector<128xf32>
    %31 = vector.shape_cast %30 : vector<128xf32> to vector<1x1x1x128xf32>
    %32 = vector.extract_strided_slice %5 {offsets = [0, 1, 0, 0], sizes = [1, 4, 4, 128], strides = [1, 1, 1, 1]} : vector<1x6x6x128xf32> to vector<1x4x4x128xf32>
    %33 = vector.broadcast %31 : vector<1x1x1x128xf32> to vector<1x4x4x128xf32>
    %34 = arith.mulf %32, %33 : vector<1x4x4x128xf32>
    %35 = arith.addf %28, %34 : vector<1x4x4x128xf32>
    %36 = vector.extract_strided_slice %6 {offsets = [4, 0], sizes = [1, 128], strides = [1, 1]} : vector<9x128xf32> to vector<1x128xf32>
    %37 = vector.shape_cast %36 : vector<1x128xf32> to vector<128xf32>
    %38 = vector.shape_cast %37 : vector<128xf32> to vector<1x1x1x128xf32>
    %39 = vector.extract_strided_slice %5 {offsets = [0, 1, 1, 0], sizes = [1, 4, 4, 128], strides = [1, 1, 1, 1]} : vector<1x6x6x128xf32> to vector<1x4x4x128xf32>
    %40 = vector.broadcast %38 : vector<1x1x1x128xf32> to vector<1x4x4x128xf32>
    %41 = arith.mulf %39, %40 : vector<1x4x4x128xf32>
    %42 = arith.addf %35, %41 : vector<1x4x4x128xf32>
    %43 = vector.extract_strided_slice %6 {offsets = [5, 0], sizes = [1, 128], strides = [1, 1]} : vector<9x128xf32> to vector<1x128xf32>
    %44 = vector.shape_cast %43 : vector<1x128xf32> to vector<128xf32>
    %45 = vector.shape_cast %44 : vector<128xf32> to vector<1x1x1x128xf32>
    %46 = vector.extract_strided_slice %5 {offsets = [0, 1, 2, 0], sizes = [1, 4, 4, 128], strides = [1, 1, 1, 1]} : vector<1x6x6x128xf32> to vector<1x4x4x128xf32>
    %47 = vector.broadcast %45 : vector<1x1x1x128xf32> to vector<1x4x4x128xf32>
    %48 = arith.mulf %46, %47 : vector<1x4x4x128xf32>
    %49 = arith.addf %42, %48 : vector<1x4x4x128xf32>
    %50 = vector.extract_strided_slice %6 {offsets = [6, 0], sizes = [1, 128], strides = [1, 1]} : vector<9x128xf32> to vector<1x128xf32>
    %51 = vector.shape_cast %50 : vector<1x128xf32> to vector<128xf32>
    %52 = vector.shape_cast %51 : vector<128xf32> to vector<1x1x1x128xf32>
    %53 = vector.extract_strided_slice %5 {offsets = [0, 2, 0, 0], sizes = [1, 4, 4, 128], strides = [1, 1, 1, 1]} : vector<1x6x6x128xf32> to vector<1x4x4x128xf32>
    %54 = vector.broadcast %52 : vector<1x1x1x128xf32> to vector<1x4x4x128xf32>
    %55 = arith.mulf %53, %54 : vector<1x4x4x128xf32>
    %56 = arith.addf %49, %55 : vector<1x4x4x128xf32>
    %57 = vector.extract_strided_slice %6 {offsets = [7, 0], sizes = [1, 128], strides = [1, 1]} : vector<9x128xf32> to vector<1x128xf32>
    %58 = vector.shape_cast %57 : vector<1x128xf32> to vector<128xf32>
    %59 = vector.shape_cast %58 : vector<128xf32> to vector<1x1x1x128xf32>
    %60 = vector.extract_strided_slice %5 {offsets = [0, 2, 1, 0], sizes = [1, 4, 4, 128], strides = [1, 1, 1, 1]} : vector<1x6x6x128xf32> to vector<1x4x4x128xf32>
    %61 = vector.broadcast %59 : vector<1x1x1x128xf32> to vector<1x4x4x128xf32>
    %62 = arith.mulf %60, %61 : vector<1x4x4x128xf32>
    %63 = arith.addf %56, %62 : vector<1x4x4x128xf32>
    %64 = vector.extract_strided_slice %6 {offsets = [8, 0], sizes = [1, 128], strides = [1, 1]} : vector<9x128xf32> to vector<1x128xf32>
    %65 = vector.shape_cast %64 : vector<1x128xf32> to vector<128xf32>
    %66 = vector.shape_cast %65 : vector<128xf32> to vector<1x1x1x128xf32>
    %67 = vector.extract_strided_slice %5 {offsets = [0, 2, 2, 0], sizes = [1, 4, 4, 128], strides = [1, 1, 1, 1]} : vector<1x6x6x128xf32> to vector<1x4x4x128xf32>
    %68 = vector.broadcast %66 : vector<1x1x1x128xf32> to vector<1x4x4x128xf32>
    %69 = arith.mulf %67, %68 : vector<1x4x4x128xf32>
    %70 = arith.addf %63, %69 : vector<1x4x4x128xf32>
    %c0_17 = arith.constant 0 : index
    %c0_18 = arith.constant 0 : index
    %71 = vector.load %arg3[%c0_17, %c0_18] : memref<1x128xf32, #tpu.memory_space<vmem>>, vector<1x128xf32>
    %72 = vector.shape_cast %71 : vector<1x128xf32> to vector<1x1x1x128xf32>
    %73 = vector.broadcast %72 : vector<1x1x1x128xf32> to vector<1x4x4x128xf32>
    %74 = arith.addf %70, %73 : vector<1x4x4x128xf32>
    %cst_19 = arith.constant 5.000000e-01 : f32
    %75 = vector.broadcast %cst_19 : f32 to vector<1x4x4x128xf32>
    %76 = arith.mulf %75, %74 : vector<1x4x4x128xf32>
    %cst_20 = arith.constant 0.707106769 : f32
    %77 = vector.broadcast %cst_20 : f32 to vector<1x4x4x128xf32>
    %78 = arith.mulf %74, %77 : vector<1x4x4x128xf32>
    %79 = math.erf %78 : vector<1x4x4x128xf32>
    %cst_21 = arith.constant 1.000000e+00 : f32
    %80 = vector.broadcast %cst_21 : f32 to vector<1x4x4x128xf32>
    %81 = arith.addf %80, %79 : vector<1x4x4x128xf32>
    %82 = arith.mulf %76, %81 : vector<1x4x4x128xf32>
    %c0_22 = arith.constant 0 : index
    %c0_23 = arith.constant 0 : index
    %83 = vector.load %arg4[%c0_22, %c0_23] : memref<1x128xf32, #tpu.memory_space<vmem>>, vector<1x128xf32>
    %84 = vector.shape_cast %83 : vector<1x128xf32> to vector<1x1x1x128xf32>
    %85 = vector.broadcast %84 : vector<1x1x1x128xf32> to vector<1x4x4x128xf32>
    %86 = arith.mulf %82, %85 : vector<1x4x4x128xf32>
    %c0_24 = arith.constant 0 : index
    %c0_25 = arith.constant 0 : index
    %87 = vector.load %arg5[%c0_24, %c0_25] : memref<1x128xf32, #tpu.memory_space<vmem>>, vector<1x128xf32>
    %88 = vector.shape_cast %87 : vector<1x128xf32> to vector<1x1x1x128xf32>
    %89 = vector.broadcast %88 : vector<1x1x1x128xf32> to vector<1x4x4x128xf32>
    %90 = arith.addf %86, %89 : vector<1x4x4x128xf32>
    %91 = arith.addf %90, %1 : vector<1x4x4x128xf32>
    %92 = vector.extract_strided_slice %91 {offsets = [0, 0, 0, 0], sizes = [1, 1, 4, 128], strides = [1, 1, 1, 1]} : vector<1x4x4x128xf32> to vector<1x1x4x128xf32>
    %93 = vector.shape_cast %92 : vector<1x1x4x128xf32> to vector<4x128xf32>
    %c0_26 = arith.constant 0 : index
    %c0_27 = arith.constant 0 : index
    %94 = vector.load %arg13[%c0_26, %c0_27] : memref<16x128xf32, #tpu.memory_space<vmem>>, vector<4x128xf32>
    tpu.vector_store %arg13[%c0_26, %c0_27], %93 {strides = array<i32>} : memref<16x128xf32, #tpu.memory_space<vmem>>, vector<4x128xf32>,
    %95 = vector.extract_strided_slice %91 {offsets = [0, 1, 0, 0], sizes = [1, 1, 4, 128], strides = [1, 1, 1, 1]} : vector<1x4x4x128xf32> to vector<1x1x4x128xf32>
    %96 = vector.shape_cast %95 : vector<1x1x4x128xf32> to vector<4x128xf32>
    %c4 = arith.constant 4 : index
    %c0_28 = arith.constant 0 : index
    %97 = vector.load %arg13[%c4, %c0_28] : memref<16x128xf32, #tpu.memory_space<vmem>>, vector<4x128xf32>
    tpu.vector_store %arg13[%c4, %c0_28], %96 {strides = array<i32>} : memref<16x128xf32, #tpu.memory_space<vmem>>, vector<4x128xf32>,
    %98 = vector.extract_strided_slice %91 {offsets = [0, 2, 0, 0], sizes = [1, 1, 4, 128], strides = [1, 1, 1, 1]} : vector<1x4x4x128xf32> to vector<1x1x4x128xf32>
    %99 = vector.shape_cast %98 : vector<1x1x4x128xf32> to vector<4x128xf32>
    %c8 = arith.constant 8 : index
    %c0_29 = arith.constant 0 : index
    %100 = vector.load %arg13[%c8, %c0_29] : memref<16x128xf32, #tpu.memory_space<vmem>>, vector<4x128xf32>
    tpu.vector_store %arg13[%c8, %c0_29], %99 {strides = array<i32>} : memref<16x128xf32, #tpu.memory_space<vmem>>, vector<4x128xf32>,
    %101 = vector.extract_strided_slice %91 {offsets = [0, 3, 0, 0], sizes = [1, 1, 4, 128], strides = [1, 1, 1, 1]} : vector<1x4x4x128xf32> to vector<1x1x4x128xf32>
    %102 = vector.shape_cast %101 : vector<1x1x4x128xf32> to vector<4x128xf32>
    %c12 = arith.constant 12 : index
    %c0_30 = arith.constant 0 : index
    %103 = vector.load %arg13[%c12, %c0_30] : memref<16x128xf32, #tpu.memory_space<vmem>>, vector<4x128xf32>
    tpu.vector_store %arg13[%c12, %c0_30], %102 {strides = array<i32>} : memref<16x128xf32, #tpu.memory_space<vmem>>, vector<4x128xf32>,
    %c0_31 = arith.constant 0 : index
    %c0_32 = arith.constant 0 : index
    %104 = vector.load %arg13[%c0_31, %c0_32] : memref<16x128xf32, #tpu.memory_space<vmem>>, vector<16x128xf32>
    %105 = arith.truncf %104 : vector<16x128xf32> to vector<16x128xbf16>
    %c0_33 = arith.constant 0 : index
    %c0_34 = arith.constant 0 : index
    %106 = vector.load %arg6[%c0_33, %c0_34] : memref<128x128xbf16, #tpu.memory_space<vmem>>, vector<128x128xbf16>
    %cst_35 = arith.constant dense<0.000000e+00> : vector<16x128xf32>
    %107 = tpu.matmul %105, %106, %cst_35 {dimension_numbers = #tpu.dot_dimension_numbers<[1], [0], [0], [1], [0, 0, 1, 1], [], []>} : vector<16x128xbf16>, vector<128x128xbf16>, vector<16x128xf32> -> vector<16x128xf32>
    %c0_36 = arith.constant 0 : index
    %c0_37 = arith.constant 0 : index
    %108 = vector.load %arg7[%c0_36, %c0_37] : memref<1x128xf32, #tpu.memory_space<vmem>>, vector<1x128xf32>
    %109 = vector.broadcast %108 : vector<1x128xf32> to vector<16x128xf32>
    %110 = arith.addf %107, %109 : vector<16x128xf32>
    %cst_38 = arith.constant 5.000000e-01 : f32
    %111 = vector.broadcast %cst_38 : f32 to vector<16x128xf32>
    %112 = arith.mulf %111, %110 : vector<16x128xf32>
    %cst_39 = arith.constant 0.707106769 : f32
    %113 = vector.broadcast %cst_39 : f32 to vector<16x128xf32>
    %114 = arith.mulf %110, %113 : vector<16x128xf32>
    %115 = math.erf %114 : vector<16x128xf32>
    %cst_40 = arith.constant 1.000000e+00 : f32
    %116 = vector.broadcast %cst_40 : f32 to vector<16x128xf32>
    %117 = arith.addf %116, %115 : vector<16x128xf32>
    %118 = arith.mulf %112, %117 : vector<16x128xf32>
    %c0_41 = arith.constant 0 : index
    %c0_42 = arith.constant 0 : index
    %119 = vector.load %arg8[%c0_41, %c0_42] : memref<1x128xf32, #tpu.memory_space<vmem>>, vector<1x128xf32>
    %120 = vector.broadcast %119 : vector<1x128xf32> to vector<16x128xf32>
    %121 = arith.mulf %118, %120 : vector<16x128xf32>
    %c0_43 = arith.constant 0 : index
    %c0_44 = arith.constant 0 : index
    %122 = vector.load %arg9[%c0_43, %c0_44] : memref<1x128xf32, #tpu.memory_space<vmem>>, vector<1x128xf32>
    %123 = vector.broadcast %122 : vector<1x128xf32> to vector<16x128xf32>
    %124 = arith.addf %121, %123 : vector<16x128xf32>
    %125 = arith.truncf %124 : vector<16x128xf32> to vector<16x128xbf16>
    %c0_45 = arith.constant 0 : index
    %c0_46 = arith.constant 0 : index
    %c0_47 = arith.constant 0 : index
    %126 = vector.load %arg10[%c0_45, %c0_46, %c0_47] : memref<1x16x128xbf16, #tpu.memory_space<vmem>>, vector<1x16x128xbf16>
    %127 = vector.shape_cast %126 : vector<1x16x128xbf16> to vector<16x128xbf16>
    %128 = vector.shape_cast %125 : vector<16x128xbf16> to vector<1x16x128xbf16>
    tpu.vector_store %arg10[%c0_45, %c0_46, %c0_47], %128 {strides = array<i32>} : memref<1x16x128xbf16, #tpu.memory_space<vmem>>, vector<1x16x128xbf16>,
    %cst_48 = arith.constant dense<0.000000e+00> : vector<128xf32>
    %129 = vector.multi_reduction <add>, %124, %cst_48 [0] : vector<16x128xf32> to vector<128xf32>
    %130 = vector.shape_cast %129 : vector<128xf32> to vector<1x128xf32>
    %cst_49 = arith.constant 6.250000e-02 : f32
    %131 = vector.broadcast %cst_49 : f32 to vector<1x128xf32>
    %132 = arith.mulf %130, %131 : vector<1x128xf32>
    %c0_50 = arith.constant 0 : index
    %c0_51 = arith.constant 0 : index
    %c0_52 = arith.constant 0 : index
    %133 = vector.load %arg11[%c0_50, %c0_51, %c0_52] : memref<1x1x128xf32, #tpu.memory_space<vmem>>, vector<1x1x128xf32>
    %134 = vector.shape_cast %133 : vector<1x1x128xf32> to vector<1x128xf32>
    %135 = vector.shape_cast %132 : vector<1x128xf32> to vector<1x1x128xf32>
    tpu.vector_store %arg11[%c0_50, %c0_51, %c0_52], %135 {strides = array<i32>} : memref<1x1x128xf32, #tpu.memory_space<vmem>>, vector<1x1x128xf32>,
    return
  }
  func.func @transform_0(%arg0: i32) -> (i32, i32, i32, i32) {
    %c0_i32 = arith.constant 0 : i32
    %c0_i32_0 = arith.constant 0 : i32
    %c0_i32_1 = arith.constant 0 : i32
    %c0_i32_2 = arith.constant 0 : i32
    return %arg0, %c0_i32, %c0_i32_0, %c0_i32_1 : i32, i32, i32, i32
  }
  func.func @transform_1(%arg0: i32) -> (i32, i32) {
    %c0_i32 = arith.constant 0 : i32
    %c0_i32_0 = arith.constant 0 : i32
    %c0_i32_1 = arith.constant 0 : i32
    return %c0_i32, %c0_i32_0 : i32, i32
  }
  func.func @transform_2(%arg0: i32) -> (i32, i32) {
    %c0_i32 = arith.constant 0 : i32
    %c0_i32_0 = arith.constant 0 : i32
    %c0_i32_1 = arith.constant 0 : i32
    return %c0_i32, %c0_i32_0 : i32, i32
  }
  func.func @transform_3(%arg0: i32) -> (i32, i32) {
    %c0_i32 = arith.constant 0 : i32
    %c0_i32_0 = arith.constant 0 : i32
    %c0_i32_1 = arith.constant 0 : i32
    return %c0_i32, %c0_i32_0 : i32, i32
  }
  func.func @transform_4(%arg0: i32) -> (i32, i32) {
    %c0_i32 = arith.constant 0 : i32
    %c0_i32_0 = arith.constant 0 : i32
    %c0_i32_1 = arith.constant 0 : i32
    return %c0_i32, %c0_i32_0 : i32, i32
  }
  func.func @transform_5(%arg0: i32) -> (i32, i32) {
    %c0_i32 = arith.constant 0 : i32
    %c0_i32_0 = arith.constant 0 : i32
    %c0_i32_1 = arith.constant 0 : i32
    return %c0_i32, %c0_i32_0 : i32, i32
  }
  func.func @transform_6(%arg0: i32) -> (i32, i32) {
    %c0_i32 = arith.constant 0 : i32
    %c0_i32_0 = arith.constant 0 : i32
    %c0_i32_1 = arith.constant 0 : i32
    return %c0_i32, %c0_i32_0 : i32, i32
  }
  func.func @transform_7(%arg0: i32) -> (i32, i32) {
    %c0_i32 = arith.constant 0 : i32
    %c0_i32_0 = arith.constant 0 : i32
    %c0_i32_1 = arith.constant 0 : i32
    return %c0_i32, %c0_i32_0 : i32, i32
  }
  func.func @transform_8(%arg0: i32) -> (i32, i32) {
    %c0_i32 = arith.constant 0 : i32
    %c0_i32_0 = arith.constant 0 : i32
    %c0_i32_1 = arith.constant 0 : i32
    return %c0_i32, %c0_i32_0 : i32, i32
  }
  func.func @transform_9(%arg0: i32) -> (i32, i32, i32) {
    %c0_i32 = arith.constant 0 : i32
    %c0_i32_0 = arith.constant 0 : i32
    %c0_i32_1 = arith.constant 0 : i32
    return %arg0, %c0_i32, %c0_i32_0 : i32, i32, i32
  }
  func.func @transform_10(%arg0: i32) -> (i32, i32, i32) {
    %c0_i32 = arith.constant 0 : i32
    %c0_i32_0 = arith.constant 0 : i32
    %c0_i32_1 = arith.constant 0 : i32
    return %arg0, %c0_i32, %c0_i32_0 : i32, i32, i32
  }
}

module attributes {stable_mosaic.version = 11 : i64} {
  func.func @_mixer_block_kernel(%arg0: i32, %arg1: memref<1x4x4x128xbf16, #tpu.memory_space<vmem>>, %arg2: memref<9x128xf32, #tpu.memory_space<vmem>>, %arg3: memref<1x128xf32, #tpu.memory_space<vmem>>, %arg4: memref<1x128xf32, #tpu.memory_space<vmem>>, %arg5: memref<1x128xf32, #tpu.memory_space<vmem>>, %arg6: memref<128x128xbf16, #tpu.memory_space<vmem>>, %arg7: memref<1x128xf32, #tpu.memory_space<vmem>>, %arg8: memref<1x128xf32, #tpu.memory_space<vmem>>, %arg9: memref<1x128xf32, #tpu.memory_space<vmem>>, %arg10: memref<1x16x128xbf16, #tpu.memory_space<vmem>>, %arg11: memref<1x1x128xf32, #tpu.memory_space<vmem>>, %arg12: memref<1x6x6x128xf32, #tpu.memory_space<vmem>>, %arg13: memref<16x128xf32, #tpu.memory_space<vmem>>) attributes {dimension_semantics = [#tpu.dimension_semantics<parallel>], iteration_bounds = array<i64: 2>, scalar_prefetch = 0 : i64, scratch_operands = 2 : i64, tpu.core_type = #tpu.core_type<tc>, window_params = [{transform_indices = @transform_0, window_bounds = array<i64: 1, 4, 4, 128>}, {pipeline_mode = #tpu.pipeline_mode<synchronous>, transform_indices = @transform_1, window_bounds = array<i64: 9, 128>}, {pipeline_mode = #tpu.pipeline_mode<synchronous>, transform_indices = @transform_2, window_bounds = array<i64: 1, 128>}, {pipeline_mode = #tpu.pipeline_mode<synchronous>, transform_indices = @transform_3, window_bounds = array<i64: 1, 128>}, {pipeline_mode = #tpu.pipeline_mode<synchronous>, transform_indices = @transform_4, window_bounds = array<i64: 1, 128>}, {pipeline_mode = #tpu.pipeline_mode<synchronous>, transform_indices = @transform_5, window_bounds = array<i64: 128, 128>}, {pipeline_mode = #tpu.pipeline_mode<synchronous>, transform_indices = @transform_6, window_bounds = array<i64: 1, 128>}, {pipeline_mode = #tpu.pipeline_mode<synchronous>, transform_indices = @transform_7, window_bounds = array<i64: 1, 128>}, {pipeline_mode = #tpu.pipeline_mode<synchronous>, transform_indices = @transform_8, window_bounds = array<i64: 1, 128>}, {transform_indices = @transform_9, window_bounds = array<i64: 1, 16, 128>}, {transform_indices = @transform_10, window_bounds = array<i64: 1, 1, 128>}]} {
    %c0 = arith.constant 0 : index
    %c0_0 = arith.constant 0 : index
    %c0_1 = arith.constant 0 : index
    %c0_2 = arith.constant 0 : index
    %0 = vector.load %arg1[%c0, %c0_0, %c0_1, %c0_2] : memref<1x4x4x128xbf16, #tpu.memory_space<vmem>>, vector<1x4x4x128xbf16>
    %1 = arith.extf %0 : vector<1x4x4x128xbf16> to vector<1x4x4x128xf32>
    %cst = arith.constant 0.000000e+00 : f32
    %2 = vector.broadcast %cst : f32 to vector<1x6x6x128xf32>
    %c0_3 = arith.constant 0 : index
    %c0_4 = arith.constant 0 : index
    %c0_5 = arith.constant 0 : index
    %c0_6 = arith.constant 0 : index
    %3 = vector.load %arg12[%c0_3, %c0_4, %c0_5, %c0_6] : memref<1x6x6x128xf32, #tpu.memory_space<vmem>>, vector<1x6x6x128xf32>
    tpu.vector_store %arg12[%c0_3, %c0_4, %c0_5, %c0_6], %2 {strides = array<i32>} : memref<1x6x6x128xf32, #tpu.memory_space<vmem>>, vector<1x6x6x128xf32>,
    %c0_7 = arith.constant 0 : index
    %c1 = arith.constant 1 : index
    %c1_8 = arith.constant 1 : index
    %c0_9 = arith.constant 0 : index
    %4 = vector.load %arg12[%c0_7, %c1, %c1_8, %c0_9] : memref<1x6x6x128xf32, #tpu.memory_space<vmem>>, vector<1x4x4x128xf32>
    tpu.vector_store %arg12[%c0_7, %c1, %c1_8, %c0_9], %1 {strides = array<i32>} : memref<1x6x6x128xf32, #tpu.memory_space<vmem>>, vector<1x4x4x128xf32>,
    %c0_10 = arith.constant 0 : index
    %c0_11 = arith.constant 0 : index
    %c0_12 = arith.constant 0 : index
    %c0_13 = arith.constant 0 : index
    %5 = vector.load %arg12[%c0_10, %c0_11, %c0_12, %c0_13] : memref<1x6x6x128xf32, #tpu.memory_space<vmem>>, vector<1x6x6x128xf32>
    %c0_14 = arith.constant 0 : index
    %c0_15 = arith.constant 0 : index
    %6 = vector.load %arg2[%c0_14, %c0_15] : memref<9x128xf32, #tpu.memory_space<vmem>>, vector<9x128xf32>
    %cst_16 = arith.constant 0.000000e+00 : f32
    %7 = vector.broadcast %cst_16 : f32 to vector<1x4x4x128xf32>
    %8 = vector.extract_strided_slice %6 {offsets = [0, 0], sizes = [1, 128], strides = [1, 1]} : vector<9x128xf32> to vector<1x128xf32>
    %9 = vector.shape_cast %8 : vector<1x128xf32> to vector<128xf32>
    %10 = vector.shape_cast %9 : vector<128xf32> to vector<1x1x1x128xf32>
    %11 = vector.extract_strided_slice %5 {offsets = [0, 0, 0, 0], sizes = [1, 4, 4, 128], strides = [1, 1, 1, 1]} : vector<1x6x6x128xf32> to vector<1x4x4x128xf32>
    %12 = vector.broadcast %10 : vector<1x1x1x128xf32> to vector<1x4x4x128xf32>
    %13 = arith.mulf %11, %12 : vector<1x4x4x128xf32>
    %14 = arith.addf %7, %13 : vector<1x4x4x128xf32>
    %15 = vector.extract_strided_slice %6 {offsets = [1, 0], sizes = [1, 128], strides = [1, 1]} : vector<9x128xf32> to vector<1x128xf32>
    %16 = vector.shape_cast %15 : vector<1x128xf32> to vector<128xf32>
    %17 = vector.shape_cast %16 : vector<128xf32> to vector<1x1x1x128xf32>
    %18 = vector.extract_strided_slice %5 {offsets = [0, 0, 1, 0], sizes = [1, 4, 4, 128], strides = [1, 1, 1, 1]} : vector<1x6x6x128xf32> to vector<1x4x4x128xf32>
    %19 = vector.broadcast %17 : vector<1x1x1x128xf32> to vector<1x4x4x128xf32>
    %20 = arith.mulf %18, %19 : vector<1x4x4x128xf32>
    %21 = arith.addf %14, %20 : vector<1x4x4x128xf32>
    %22 = vector.extract_strided_slice %6 {offsets = [2, 0], sizes = [1, 128], strides = [1, 1]} : vector<9x128xf32> to vector<1x128xf32>
    %23 = vector.shape_cast %22 : vector<1x128xf32> to vector<128xf32>
    %24 = vector.shape_cast %23 : vector<128xf32> to vector<1x1x1x128xf32>
    %25 = vector.extract_strided_slice %5 {offsets = [0, 0, 2, 0], sizes = [1, 4, 4, 128], strides = [1, 1, 1, 1]} : vector<1x6x6x128xf32> to vector<1x4x4x128xf32>
    %26 = vector.broadcast %24 : vector<1x1x1x128xf32> to vector<1x4x4x128xf32>
    %27 = arith.mulf %25, %26 : vector<1x4x4x128xf32>
    %28 = arith.addf %21, %27 : vector<1x4x4x128xf32>
    %29 = vector.extract_strided_slice %6 {offsets = [3, 0], sizes = [1, 128], strides = [1, 1]} : vector<9x128xf32> to vector<1x128xf32>
    %30 = vector.shape_cast %29 : vector<1x128xf32> to vector<128xf32>
    %31 = vector.shape_cast %30 : vector<128xf32> to vector<1x1x1x128xf32>
    %32 = vector.extract_strided_slice %5 {offsets = [0, 1, 0, 0], sizes = [1, 4, 4, 128], strides = [1, 1, 1, 1]} : vector<1x6x6x128xf32> to vector<1x4x4x128xf32>
    %33 = vector.broadcast %31 : vector<1x1x1x128xf32> to vector<1x4x4x128xf32>
    %34 = arith.mulf %32, %33 : vector<1x4x4x128xf32>
    %35 = arith.addf %28, %34 : vector<1x4x4x128xf32>
    %36 = vector.extract_strided_slice %6 {offsets = [4, 0], sizes = [1, 128], strides = [1, 1]} : vector<9x128xf32> to vector<1x128xf32>
    %37 = vector.shape_cast %36 : vector<1x128xf32> to vector<128xf32>
    %38 = vector.shape_cast %37 : vector<128xf32> to vector<1x1x1x128xf32>
    %39 = vector.extract_strided_slice %5 {offsets = [0, 1, 1, 0], sizes = [1, 4, 4, 128], strides = [1, 1, 1, 1]} : vector<1x6x6x128xf32> to vector<1x4x4x128xf32>
    %40 = vector.broadcast %38 : vector<1x1x1x128xf32> to vector<1x4x4x128xf32>
    %41 = arith.mulf %39, %40 : vector<1x4x4x128xf32>
    %42 = arith.addf %35, %41 : vector<1x4x4x128xf32>
    %43 = vector.extract_strided_slice %6 {offsets = [5, 0], sizes = [1, 128], strides = [1, 1]} : vector<9x128xf32> to vector<1x128xf32>
    %44 = vector.shape_cast %43 : vector<1x128xf32> to vector<128xf32>
    %45 = vector.shape_cast %44 : vector<128xf32> to vector<1x1x1x128xf32>
    %46 = vector.extract_strided_slice %5 {offsets = [0, 1, 2, 0], sizes = [1, 4, 4, 128], strides = [1, 1, 1, 1]} : vector<1x6x6x128xf32> to vector<1x4x4x128xf32>
    %47 = vector.broadcast %45 : vector<1x1x1x128xf32> to vector<1x4x4x128xf32>
    %48 = arith.mulf %46, %47 : vector<1x4x4x128xf32>
    %49 = arith.addf %42, %48 : vector<1x4x4x128xf32>
    %50 = vector.extract_strided_slice %6 {offsets = [6, 0], sizes = [1, 128], strides = [1, 1]} : vector<9x128xf32> to vector<1x128xf32>
    %51 = vector.shape_cast %50 : vector<1x128xf32> to vector<128xf32>
    %52 = vector.shape_cast %51 : vector<128xf32> to vector<1x1x1x128xf32>
    %53 = vector.extract_strided_slice %5 {offsets = [0, 2, 0, 0], sizes = [1, 4, 4, 128], strides = [1, 1, 1, 1]} : vector<1x6x6x128xf32> to vector<1x4x4x128xf32>
    %54 = vector.broadcast %52 : vector<1x1x1x128xf32> to vector<1x4x4x128xf32>
    %55 = arith.mulf %53, %54 : vector<1x4x4x128xf32>
    %56 = arith.addf %49, %55 : vector<1x4x4x128xf32>
    %57 = vector.extract_strided_slice %6 {offsets = [7, 0], sizes = [1, 128], strides = [1, 1]} : vector<9x128xf32> to vector<1x128xf32>
    %58 = vector.shape_cast %57 : vector<1x128xf32> to vector<128xf32>
    %59 = vector.shape_cast %58 : vector<128xf32> to vector<1x1x1x128xf32>
    %60 = vector.extract_strided_slice %5 {offsets = [0, 2, 1, 0], sizes = [1, 4, 4, 128], strides = [1, 1, 1, 1]} : vector<1x6x6x128xf32> to vector<1x4x4x128xf32>
    %61 = vector.broadcast %59 : vector<1x1x1x128xf32> to vector<1x4x4x128xf32>
    %62 = arith.mulf %60, %61 : vector<1x4x4x128xf32>
    %63 = arith.addf %56, %62 : vector<1x4x4x128xf32>
    %64 = vector.extract_strided_slice %6 {offsets = [8, 0], sizes = [1, 128], strides = [1, 1]} : vector<9x128xf32> to vector<1x128xf32>
    %65 = vector.shape_cast %64 : vector<1x128xf32> to vector<128xf32>
    %66 = vector.shape_cast %65 : vector<128xf32> to vector<1x1x1x128xf32>
    %67 = vector.extract_strided_slice %5 {offsets = [0, 2, 2, 0], sizes = [1, 4, 4, 128], strides = [1, 1, 1, 1]} : vector<1x6x6x128xf32> to vector<1x4x4x128xf32>
    %68 = vector.broadcast %66 : vector<1x1x1x128xf32> to vector<1x4x4x128xf32>
    %69 = arith.mulf %67, %68 : vector<1x4x4x128xf32>
    %70 = arith.addf %63, %69 : vector<1x4x4x128xf32>
    %c0_17 = arith.constant 0 : index
    %c0_18 = arith.constant 0 : index
    %71 = vector.load %arg3[%c0_17, %c0_18] : memref<1x128xf32, #tpu.memory_space<vmem>>, vector<1x128xf32>
    %72 = vector.shape_cast %71 : vector<1x128xf32> to vector<1x1x1x128xf32>
    %73 = vector.broadcast %72 : vector<1x1x1x128xf32> to vector<1x4x4x128xf32>
    %74 = arith.addf %70, %73 : vector<1x4x4x128xf32>
    %cst_19 = arith.constant 5.000000e-01 : f32
    %75 = vector.broadcast %cst_19 : f32 to vector<1x4x4x128xf32>
    %76 = arith.mulf %75, %74 : vector<1x4x4x128xf32>
    %cst_20 = arith.constant 0.707106769 : f32
    %77 = vector.broadcast %cst_20 : f32 to vector<1x4x4x128xf32>
    %78 = arith.mulf %74, %77 : vector<1x4x4x128xf32>
    %79 = math.erf %78 : vector<1x4x4x128xf32>
    %cst_21 = arith.constant 1.000000e+00 : f32
    %80 = vector.broadcast %cst_21 : f32 to vector<1x4x4x128xf32>
    %81 = arith.addf %80, %79 : vector<1x4x4x128xf32>
    %82 = arith.mulf %76, %81 : vector<1x4x4x128xf32>
    %c0_22 = arith.constant 0 : index
    %c0_23 = arith.constant 0 : index
    %83 = vector.load %arg4[%c0_22, %c0_23] : memref<1x128xf32, #tpu.memory_space<vmem>>, vector<1x128xf32>
    %84 = vector.shape_cast %83 : vector<1x128xf32> to vector<1x1x1x128xf32>
    %85 = vector.broadcast %84 : vector<1x1x1x128xf32> to vector<1x4x4x128xf32>
    %86 = arith.mulf %82, %85 : vector<1x4x4x128xf32>
    %c0_24 = arith.constant 0 : index
    %c0_25 = arith.constant 0 : index
    %87 = vector.load %arg5[%c0_24, %c0_25] : memref<1x128xf32, #tpu.memory_space<vmem>>, vector<1x128xf32>
    %88 = vector.shape_cast %87 : vector<1x128xf32> to vector<1x1x1x128xf32>
    %89 = vector.broadcast %88 : vector<1x1x1x128xf32> to vector<1x4x4x128xf32>
    %90 = arith.addf %86, %89 : vector<1x4x4x128xf32>
    %91 = arith.addf %90, %1 : vector<1x4x4x128xf32>
    %92 = vector.extract_strided_slice %91 {offsets = [0, 0, 0, 0], sizes = [1, 1, 4, 128], strides = [1, 1, 1, 1]} : vector<1x4x4x128xf32> to vector<1x1x4x128xf32>
    %93 = vector.shape_cast %92 : vector<1x1x4x128xf32> to vector<4x128xf32>
    %c0_26 = arith.constant 0 : index
    %c0_27 = arith.constant 0 : index
    %94 = vector.load %arg13[%c0_26, %c0_27] : memref<16x128xf32, #tpu.memory_space<vmem>>, vector<4x128xf32>
    tpu.vector_store %arg13[%c0_26, %c0_27], %93 {strides = array<i32>} : memref<16x128xf32, #tpu.memory_space<vmem>>, vector<4x128xf32>,
    %95 = vector.extract_strided_slice %91 {offsets = [0, 1, 0, 0], sizes = [1, 1, 4, 128], strides = [1, 1, 1, 1]} : vector<1x4x4x128xf32> to vector<1x1x4x128xf32>
    %96 = vector.shape_cast %95 : vector<1x1x4x128xf32> to vector<4x128xf32>
    %c4 = arith.constant 4 : index
    %c0_28 = arith.constant 0 : index
    %97 = vector.load %arg13[%c4, %c0_28] : memref<16x128xf32, #tpu.memory_space<vmem>>, vector<4x128xf32>
    tpu.vector_store %arg13[%c4, %c0_28], %96 {strides = array<i32>} : memref<16x128xf32, #tpu.memory_space<vmem>>, vector<4x128xf32>,
    %98 = vector.extract_strided_slice %91 {offsets = [0, 2, 0, 0], sizes = [1, 1, 4, 128], strides = [1, 1, 1, 1]} : vector<1x4x4x128xf32> to vector<1x1x4x128xf32>
    %99 = vector.shape_cast %98 : vector<1x1x4x128xf32> to vector<4x128xf32>
    %c8 = arith.constant 8 : index
    %c0_29 = arith.constant 0 : index
    %100 = vector.load %arg13[%c8, %c0_29] : memref<16x128xf32, #tpu.memory_space<vmem>>, vector<4x128xf32>
    tpu.vector_store %arg13[%c8, %c0_29], %99 {strides = array<i32>} : memref<16x128xf32, #tpu.memory_space<vmem>>, vector<4x128xf32>,
    %101 = vector.extract_strided_slice %91 {offsets = [0, 3, 0, 0], sizes = [1, 1, 4, 128], strides = [1, 1, 1, 1]} : vector<1x4x4x128xf32> to vector<1x1x4x128xf32>
    %102 = vector.shape_cast %101 : vector<1x1x4x128xf32> to vector<4x128xf32>
    %c12 = arith.constant 12 : index
    %c0_30 = arith.constant 0 : index
    %103 = vector.load %arg13[%c12, %c0_30] : memref<16x128xf32, #tpu.memory_space<vmem>>, vector<4x128xf32>
    tpu.vector_store %arg13[%c12, %c0_30], %102 {strides = array<i32>} : memref<16x128xf32, #tpu.memory_space<vmem>>, vector<4x128xf32>,
    %c0_31 = arith.constant 0 : index
    %c0_32 = arith.constant 0 : index
    %104 = vector.load %arg13[%c0_31, %c0_32] : memref<16x128xf32, #tpu.memory_space<vmem>>, vector<16x128xf32>
    %105 = arith.truncf %104 : vector<16x128xf32> to vector<16x128xbf16>
    %c0_33 = arith.constant 0 : index
    %c0_34 = arith.constant 0 : index
    %106 = vector.load %arg6[%c0_33, %c0_34] : memref<128x128xbf16, #tpu.memory_space<vmem>>, vector<128x128xbf16>
    %cst_35 = arith.constant dense<0.000000e+00> : vector<16x128xf32>
    %107 = tpu.matmul %105, %106, %cst_35 {dimension_numbers = #tpu.dot_dimension_numbers<[1], [0], [0], [1], [0, 0, 1, 1], [], []>} : vector<16x128xbf16>, vector<128x128xbf16>, vector<16x128xf32> -> vector<16x128xf32>
    %c0_36 = arith.constant 0 : index
    %c0_37 = arith.constant 0 : index
    %108 = vector.load %arg7[%c0_36, %c0_37] : memref<1x128xf32, #tpu.memory_space<vmem>>, vector<1x128xf32>
    %109 = vector.broadcast %108 : vector<1x128xf32> to vector<16x128xf32>
    %110 = arith.addf %107, %109 : vector<16x128xf32>
    %cst_38 = arith.constant 5.000000e-01 : f32
    %111 = vector.broadcast %cst_38 : f32 to vector<16x128xf32>
    %112 = arith.mulf %111, %110 : vector<16x128xf32>
    %cst_39 = arith.constant 0.707106769 : f32
    %113 = vector.broadcast %cst_39 : f32 to vector<16x128xf32>
    %114 = arith.mulf %110, %113 : vector<16x128xf32>
    %115 = math.erf %114 : vector<16x128xf32>
    %cst_40 = arith.constant 1.000000e+00 : f32
    %116 = vector.broadcast %cst_40 : f32 to vector<16x128xf32>
    %117 = arith.addf %116, %115 : vector<16x128xf32>
    %118 = arith.mulf %112, %117 : vector<16x128xf32>
    %c0_41 = arith.constant 0 : index
    %c0_42 = arith.constant 0 : index
    %119 = vector.load %arg8[%c0_41, %c0_42] : memref<1x128xf32, #tpu.memory_space<vmem>>, vector<1x128xf32>
    %120 = vector.broadcast %119 : vector<1x128xf32> to vector<16x128xf32>
    %121 = arith.mulf %118, %120 : vector<16x128xf32>
    %c0_43 = arith.constant 0 : index
    %c0_44 = arith.constant 0 : index
    %122 = vector.load %arg9[%c0_43, %c0_44] : memref<1x128xf32, #tpu.memory_space<vmem>>, vector<1x128xf32>
    %123 = vector.broadcast %122 : vector<1x128xf32> to vector<16x128xf32>
    %124 = arith.addf %121, %123 : vector<16x128xf32>
    %125 = arith.truncf %124 : vector<16x128xf32> to vector<16x128xbf16>
    %c0_45 = arith.constant 0 : index
    %c0_46 = arith.constant 0 : index
    %c0_47 = arith.constant 0 : index
    %126 = vector.load %arg10[%c0_45, %c0_46, %c0_47] : memref<1x16x128xbf16, #tpu.memory_space<vmem>>, vector<1x16x128xbf16>
    %127 = vector.shape_cast %126 : vector<1x16x128xbf16> to vector<16x128xbf16>
    %128 = vector.shape_cast %125 : vector<16x128xbf16> to vector<1x16x128xbf16>
    tpu.vector_store %arg10[%c0_45, %c0_46, %c0_47], %128 {strides = array<i32>} : memref<1x16x128xbf16, #tpu.memory_space<vmem>>, vector<1x16x128xbf16>,
    %cst_48 = arith.constant dense<0.000000e+00> : vector<128xf32>
    %129 = vector.multi_reduction <add>, %124, %cst_48 [0] : vector<16x128xf32> to vector<128xf32>
    %130 = vector.shape_cast %129 : vector<128xf32> to vector<1x128xf32>
    %cst_49 = arith.constant 6.250000e-02 : f32
    %131 = vector.broadcast %cst_49 : f32 to vector<1x128xf32>
    %132 = arith.mulf %130, %131 : vector<1x128xf32>
    %c0_50 = arith.constant 0 : index
    %c0_51 = arith.constant 0 : index
    %c0_52 = arith.constant 0 : index
    %133 = vector.load %arg11[%c0_50, %c0_51, %c0_52] : memref<1x1x128xf32, #tpu.memory_space<vmem>>, vector<1x1x128xf32>
    %134 = vector.shape_cast %133 : vector<1x1x128xf32> to vector<1x128xf32>
    %135 = vector.shape_cast %132 : vector<1x128xf32> to vector<1x1x128xf32>
    tpu.vector_store %arg11[%c0_50, %c0_51, %c0_52], %135 {strides = array<i32>} : memref<1x1x128xf32, #tpu.memory_space<vmem>>, vector<1x1x128xf32>,
    return
  }
  func.func @transform_0(%arg0: i32) -> (i32, i32, i32, i32) {
    %c0_i32 = arith.constant 0 : i32
    %c0_i32_0 = arith.constant 0 : i32
    %c0_i32_1 = arith.constant 0 : i32
    %c0_i32_2 = arith.constant 0 : i32
    return %arg0, %c0_i32, %c0_i32_0, %c0_i32_1 : i32, i32, i32, i32
  }
  func.func @transform_1(%arg0: i32) -> (i32, i32) {
    %c0_i32 = arith.constant 0 : i32
    %c0_i32_0 = arith.constant 0 : i32
    %c0_i32_1 = arith.constant 0 : i32
    return %c0_i32, %c0_i32_0 : i32, i32
  }
  func.func @transform_2(%arg0: i32) -> (i32, i32) {
    %c0_i32 = arith.constant 0 : i32
    %c0_i32_0 = arith.constant 0 : i32
    %c0_i32_1 = arith.constant 0 : i32
    return %c0_i32, %c0_i32_0 : i32, i32
  }
  func.func @transform_3(%arg0: i32) -> (i32, i32) {
    %c0_i32 = arith.constant 0 : i32
    %c0_i32_0 = arith.constant 0 : i32
    %c0_i32_1 = arith.constant 0 : i32
    return %c0_i32, %c0_i32_0 : i32, i32
  }
  func.func @transform_4(%arg0: i32) -> (i32, i32) {
    %c0_i32 = arith.constant 0 : i32
    %c0_i32_0 = arith.constant 0 : i32
    %c0_i32_1 = arith.constant 0 : i32
    return %c0_i32, %c0_i32_0 : i32, i32
  }
  func.func @transform_5(%arg0: i32) -> (i32, i32) {
    %c0_i32 = arith.constant 0 : i32
    %c0_i32_0 = arith.constant 0 : i32
    %c0_i32_1 = arith.constant 0 : i32
    return %c0_i32, %c0_i32_0 : i32, i32
  }
  func.func @transform_6(%arg0: i32) -> (i32, i32) {
    %c0_i32 = arith.constant 0 : i32
    %c0_i32_0 = arith.constant 0 : i32
    %c0_i32_1 = arith.constant 0 : i32
    return %c0_i32, %c0_i32_0 : i32, i32
  }
  func.func @transform_7(%arg0: i32) -> (i32, i32) {
    %c0_i32 = arith.constant 0 : i32
    %c0_i32_0 = arith.constant 0 : i32
    %c0_i32_1 = arith.constant 0 : i32
    return %c0_i32, %c0_i32_0 : i32, i32
  }
  func.func @transform_8(%arg0: i32) -> (i32, i32) {
    %c0_i32 = arith.constant 0 : i32
    %c0_i32_0 = arith.constant 0 : i32
    %c0_i32_1 = arith.constant 0 : i32
    return %c0_i32, %c0_i32_0 : i32, i32
  }
  func.func @transform_9(%arg0: i32) -> (i32, i32, i32) {
    %c0_i32 = arith.constant 0 : i32
    %c0_i32_0 = arith.constant 0 : i32
    %c0_i32_1 = arith.constant 0 : i32
    return %arg0, %c0_i32, %c0_i32_0 : i32, i32, i32
  }
  func.func @transform_10(%arg0: i32) -> (i32, i32, i32) {
    %c0_i32 = arith.constant 0 : i32
    %c0_i32_0 = arith.constant 0 : i32
    %c0_i32_1 = arith.constant 0 : i32
    return %arg0, %c0_i32, %c0_i32_0 : i32, i32, i32
  }
}

</mosaic_0001>

<bundles_post_ra>
// kernel: convmixer_forward.3
= control target key start
LH: loop header
LB: loop body
LE: loop exit
PB: predicated region body
PF: predicated region fallthrough
CT: control target
= control target key end

     0   :  { %vm130_vm0 = vcmask 1040384   ;;  %vm131_vm1 = vcmask 1041408   ;;  %v481_v1 = vmov 65535   ;;  %vm123_vm2 = vcmask 154624   ;;  %s667_s1 = inlined_call_operand.vmem [shape: bf16[147,128], index: 1, kind: input, shape index: {}]   ;;  %s668_s0 = inlined_call_operand.vmem [shape: bf16[32,147], index: 0, kind: input, shape index: {}]   ;;  %s669_s2 = inlined_call_operand.vmem [shape: f32[1,128], index: 2, kind: input, shape index: {}]   ;;  %s670_s3 = inlined_call_operand.vmem [shape: f32[1,128], index: 3, kind: input, shape index: {}]   ;;  %s671_s4 = inlined_call_operand.vmem [shape: f32[1,128], index: 4, kind: input, shape index: {}]   ;;  %s672_s5 = inlined_call_operand.vmem [shape: bf16[32,128], index: 5, kind: output, shape index: {}]  }
   0x1   :  { %v448_v0 = vld [vmem:[%s667_s1 + $0x38] sm:$0xff]  ;;  %v132_v2 = vsel %vm130_vm0, 4294967295, %v481_v1  ;;  %v43_v3 = vld [vmem:[%s667_s1 + $0x48] sm:$0x3]  ;;  %v447_v4 = vld [vmem:[%s667_s1 + $0x30] sm:$0xff] }
   0x2   :  { %137 = vmatpush.bf16.msra.mxu0 %v448_v0  ;;  %461 = vmatpush.bf16.msra.mxu2 %v448_v0  ;;  %v103_v5 = vunpack.c.l.b16 %v43_v3  ;;  %v133_v6 = vsel %vm131_vm1, %v132_v2, 0  ;;  %v446_v8 = vld [vmem:[%s667_s1 + $0x28] sm:$0xff]  ;;  %v449_v10 = vld [vmem:[%s667_s1 + $0x40] sm:$0xff]  ;;  %v444_v15 = vld [vmem:[%s667_s1 + $0x18] sm:$0xff] }
   0x3   :  { %v437_v11 = vld [vmem:[%s668_s0 + $0x4] sm:$0xf]  ;;  %v383_v12 = vld [vmem:[%s668_s0 + $0x8] sm:$0xf0]  ;;  %v443_v16 = vld [vmem:[%s667_s1 + $0x10] sm:$0xff] }
   0x4   :  { %v113_v7 = vpack.c.b16 %v103_v5, %v103_v5  ;;  %v445_v13 = vld [vmem:[%s667_s1 + $0x20] sm:$0xff]  ;;  %v386_v14 = vor.u32 %v437_v11, %v383_v12  ;;  %v442_v17 = vld [vmem:[%s667_s1 + $0x8] sm:$0xff]  ;;  %v439_v18 = vld [vmem:[%s668_s0 + $0x14] sm:$0xf] }
   0x5   :  { %v391_v19 = vld [vmem:[%s668_s0 + $0x18] sm:$0xf0]  ;;  %v441_v20 = vld [vmem:[%s667_s1] sm:$0xff]  ;;  %v438_v22 = vld [vmem:[%s668_s0 + $0x4] sm:$0xf0] }
   0x6   :  { %138 = vmatpush.bf16.msra.mxu0 %v447_v4  ;;  %462 = vmatpush.bf16.msra.mxu2 %v447_v4  ;;  %v135_v9 = vand.u32 %v133_v6, %v113_v7  ;;  %v381_v21 = vld [vmem:[%s668_s0] sm:$0xf]  ;;  %v389_v23 = vld [vmem:[%s668_s0 + $0x10] sm:$0xf]  ;;  %v440_v24 = vld [vmem:[%s668_s0 + $0x14] sm:$0xf0]  ;;  %v394_v25 = vor.u32 %v439_v18, %v391_v19 }
   0x7   :  { %v382_v26 = vor.u32 %v438_v22, %v381_v21  ;;  %v390_v27 = vor.u32 %v440_v24, %v389_v23  ;;  %v470_v30 = vld [vmem:[%s669_s2] ss:$0 sm:$0xff] }
   0x8   :  { %162 = vmatpush.bf16.msra.mxu1 %v135_v9 }
   0xa   :  { %139 = vmatpush.bf16.msra.mxu0 %v446_v8  ;;  %463 = vmatpush.bf16.msra.mxu2 %v446_v8 }
   0xc   :  { %163 = vmatpush.bf16.msra.mxu1 %v449_v10 }
   0xe   :  { %140 = vmatpush.bf16.msra.mxu0 %v445_v13  ;;  %464 = vmatpush.bf16.msra.mxu2 %v445_v13 }
   0xf   :  { %431 = vmatmul.msk.bf16.vlgmr.msra.gmra.mxu1 %vm123_vm2, %v386_v14 }
  0x12   :  { %141 = vmatpush.bf16.msra.mxu0 %v444_v15  ;;  %465 = vmatpush.bf16.msra.mxu2 %v444_v15 }
  0x16   :  { %142 = vmatpush.bf16.msra.mxu0 %v443_v16  ;;  %466 = vmatpush.bf16.msra.mxu2 %v443_v16 }
  0x1a   :  { %143 = vmatpush.bf16.msra.mxu0 %v442_v17  ;;  %467 = vmatpush.bf16.msra.mxu2 %v442_v17 }
  0x1e   :  { %144 = vmatpush.bf16.msra.mxu0 %v441_v20  ;;  %468 = vmatpush.bf16.msra.mxu2 %v441_v20 }
  0x1f   :  { %432 = vmatmul.msk.bf16.gmra.mxu1 %vm123_vm2, %v394_v25 }
  0x21   :  { %145 = vmatmul.bf16.vlgmr.msra.gmra.mxu0 %v382_v26  ;;  %150 = vmatmul.bf16.vlgmr.msra.gmra.mxu2 %v390_v27 }
  0x8c   :  { %v165_v28 = vpop.f32.mrf.mxu1 }
  0x94   :  { %v167_v29 = vpop.f32.mrf.mxu1 }
  0x9c   :  { %v170_v35 = vpop.f32.mrf.mxu1 }
  0x9e   :  { %v146_v31 = vpop.f32.mrf.mxu0 }
  0x9f   :  { %v147_v32 = vadd.f32 %v470_v30, %v146_v31 }
  0xa1   :  { %v571_v33 = vadd.f32 %v165_v28, %v147_v32 }
  0xa3   :  { %v574_v34 = vmul.f32 0.70710677, %v571_v33 }
  0xa4   :  { %v151_v36 = vpop.f32.mrf.mxu2  ;;  %v172_v57 = vpop.f32.mrf.mxu1 }
  0xa5   :  { %v183_v37 = vmul.f32 %v574_v34, %v574_v34  ;;  %v152_v38 = vadd.f32 %v470_v30, %v151_v36 }
  0xa6   :  { %v148_v39 = vpop.f32.mrf.mxu0 }
  0xa7   :  { %v578_v40 = vmin.f32 %v183_v37, 16.0  ;;  %v580_v41 = vadd.f32 %v170_v35, %v152_v38  ;;  %v149_v42 = vadd.f32 %v470_v30, %v148_v39 }
  0xa9   :  { %v185_v43 = vmul.f32 2.1237322e-06, %v578_v40  ;;  %v196_v44 = vmul.f32 3.8918573e-05, %v578_v40  ;;  %v584_v45 = vadd.f32 %v167_v29, %v149_v42  ;;  %v587_v46 = vmul.f32 0.70710677, %v580_v41 }
  0xab   :  { %v186_v47 = vadd.f32 0.00028619796, %v185_v43  ;;  %v197_v48 = vadd.f32 0.001143296, %v196_v44  ;;  %v263_v49 = vmul.f32 %v587_v46, %v587_v46  ;;  %v592_v50 = vmul.f32 0.70710677, %v584_v45 }
  0xac   :  { %v153_v51 = vpop.f32.mrf.mxu2 }
  0xad   :  { %v187_v52 = vmul.f32 %v186_v47, %v578_v40  ;;  %v198_v53 = vmul.f32 %v197_v48, %v578_v40  ;;  %v154_v54 = vadd.f32 %v470_v30, %v153_v51  ;;  %v596_v55 = vmin.f32 %v263_v49, 16.0 }
  0xae   :  { %v223_v56 = vmul.f32 %v592_v50, %v592_v50 }
  0xaf   :  { %v199_v58 = vadd.f32 0.014752088, %v198_v53  ;;  %v600_v59 = vadd.f32 %v172_v57, %v154_v54  ;;  %v265_v60 = vmul.f32 2.1237322e-06, %v596_v55  ;;  %v276_v61 = vmul.f32 3.8918573e-05, %v596_v55 }
  0xb0   :  { %v604_v62 = vmin.f32 %v223_v56, 16.0  ;;  %v188_v63 = vadd.f32 0.0036580483, %v187_v52 }
  0xb1   :  { %v200_v0 = vmul.f32 %v199_v58, %v578_v40  ;;  %v608_v1 = vmul.f32 0.70710677, %v600_v59  ;;  %v266_v2 = vadd.f32 0.00028619796, %v265_v60  ;;  %v277_v3 = vadd.f32 0.001143296, %v276_v61 }
  0xb2   :  { %v225_v4 = vmul.f32 2.1237322e-06, %v604_v62  ;;  %v236_v6 = vmul.f32 3.8918573e-05, %v604_v62  ;;  %v189_v10 = vmul.f32 %v188_v63, %v578_v40 }
  0xb3   :  { %v201_v5 = vadd.f32 0.112945676, %v200_v0  ;;  %v303_v7 = vmul.f32 %v608_v1, %v608_v1  ;;  %v278_v8 = vmul.f32 %v277_v3, %v596_v55  ;;  %v267_v14 = vmul.f32 %v266_v2, %v596_v55 }
  0xb4   :  { %v226_v9 = vadd.f32 0.00028619796, %v225_v4  ;;  %v237_v12 = vadd.f32 0.001143296, %v236_v6  ;;  %v190_v22 = vadd.f32 0.05243302, %v189_v10 }
  0xb5   :  { %v202_v11 = vmul.f32 %v201_v5, %v578_v40  ;;  %v617_v13 = vmin.f32 %v303_v7, 16.0  ;;  %v279_v15 = vadd.f32 0.014752088, %v278_v8  ;;  %v268_v25 = vadd.f32 0.0036580483, %v267_v14 }
  0xb6   :  { %v227_v17 = vmul.f32 %v226_v9, %v604_v62  ;;  %v238_v18 = vmul.f32 %v237_v12, %v604_v62  ;;  %v191_v35 = vmul.f32 %v190_v22, %v578_v40 }
  0xb7   :  { %v203_v16 = vadd.f32 0.4994258, %v202_v11  ;;  %v305_v19 = vmul.f32 2.1237322e-06, %v617_v13  ;;  %v280_v20 = vmul.f32 %v279_v15, %v596_v55  ;;  %v316_v21 = vmul.f32 3.8918573e-05, %v617_v13 }
  0xb8   :  { %v239_v24 = vadd.f32 0.014752088, %v238_v18  ;;  %v228_v29 = vadd.f32 0.0036580483, %v227_v17  ;;  %v269_v37 = vmul.f32 %v268_v25, %v596_v55  ;;  %v192_v47 = vadd.f32 0.18741608, %v191_v35 }
  0xb9   :  { %v204_v23 = vmul.f32 %v203_v16, %v578_v40  ;;  %v281_v26 = vadd.f32 0.112945676, %v280_v20  ;;  %v317_v27 = vadd.f32 0.001143296, %v316_v21  ;;  %v306_v31 = vadd.f32 0.00028619796, %v305_v19 }
  0xba   :  { %v240_v30 = vmul.f32 %v239_v24, %v604_v62  ;;  %v229_v39 = vmul.f32 %v228_v29, %v604_v62  ;;  %v270_v51 = vadd.f32 0.05243302, %v269_v37  ;;  %v193_v61 = vmul.f32 %v192_v47, %v578_v40 }
  0xbb   :  { %v205_v28 = vadd.f32 1.0, %v204_v23  ;;  %v282_v32 = vmul.f32 %v281_v26, %v596_v55  ;;  %v318_v36 = vmul.f32 %v317_v27, %v617_v13  ;;  %v307_v43 = vmul.f32 %v306_v31, %v617_v13 }
  0xbc   :  { %v241_v42 = vadd.f32 0.112945676, %v240_v30  ;;  %v230_v54 = vadd.f32 0.05243302, %v229_v39  ;;  %v271_v0 = vmul.f32 %v270_v51, %v596_v55  ;;  %v194_v12 = vadd.f32 1.1283791, %v193_v61 }
  0xbd   :  { %473 = vrcp.f32 %v205_v28  ;;  %v283_v38 = vadd.f32 0.4994258, %v282_v32  ;;  %v319_v49 = vadd.f32 0.014752088, %v318_v36  ;;  %v308_v57 = vadd.f32 0.0036580483, %v307_v43 }
  0xbe   :  { %v242_v48 = vmul.f32 %v241_v42, %v604_v62  ;;  %v215_v4 = vand.u32 2147483647, %v205_v28  ;;  %v217_v5 = vand.u32 2147483648, %v205_v28  ;;  %v231_v6 = vmul.f32 %v230_v54, %v604_v62 }
  0xbf   :  { %v284_v44 = vmul.f32 %v283_v38, %v596_v55  ;;  %v320_v58 = vmul.f32 %v319_v49, %v617_v13  ;;  %v309_v7 = vmul.f32 %v308_v57, %v617_v13  ;;  %vm211_vm4 = vweird.f32 %v205_v28 }
  0xc0   :  { %v243_v56 = vadd.f32 0.4994258, %v242_v48  ;;  %v218_v14 = vor.u32 1.1754944e-38, %v217_v5  ;;  %v272_v15 = vadd.f32 0.18741608, %v271_v0  ;;  %vm216_vm6 = vcmp.eq.f32.partialorder %v215_v4, 8.507059e+37 }
  0xc1   :  { %v285_v52 = vadd.f32 1.0, %v284_v44  ;;  %v321_v3 = vadd.f32 0.112945676, %v320_v58  ;;  %v232_v17 = vadd.f32 0.18741608, %v231_v6  ;;  %v195_v23 = vmul.f32 %v194_v12, %v574_v34 }
  0xc2   :  { %v244_v2 = vmul.f32 %v243_v56, %v604_v62  ;;  %v310_v19 = vadd.f32 0.05243302, %v309_v7  ;;  %v273_v25 = vmul.f32 %v272_v15, %v596_v55  ;;  %v175_v0 = vmul.f32 0.5, %v571_v33  ;;  %v472_v15 = vld [vmem:[%s671_s4] ss:$0 sm:$0xff] }
  0xc3   :  { %v474_v53 = vpop.eup %473  ;;  %475 = vrcp.f32 %v285_v52  ;;  %v322_v10 = vmul.f32 %v321_v3, %v617_v13  ;;  %v233_v27 = vmul.f32 %v232_v17, %v604_v62  ;;  %v297_v30 = vand.u32 2147483648, %v285_v52 }
  0xc4   :  { %v207_v60 = vmul.f32 %v474_v53, %v205_v28  ;;  %vm212_vm3 = vweird.f32 %v474_v53  ;;  %v245_v9 = vadd.f32 1.0, %v244_v2  ;;  %v311_v31 = vmul.f32 %v310_v19, %v617_v13 }
  0xc5   :  { %vm213_vm5 = vmor %vm211_vm4, %vm212_vm3  ;;  %v323_v20 = vadd.f32 0.4994258, %v322_v10  ;;  %vm291_vm8 = vweird.f32 %v285_v52  ;;  %v295_v36 = vand.u32 2147483647, %v285_v52  ;;  %v274_v34 = vadd.f32 1.1283791, %v273_v25 }
  0xc6   :  { %v208_v63 = vsub.f32 1.0, %v207_v60  ;;  %477 = vrcp.f32 %v245_v9  ;;  %v234_v39 = vadd.f32 1.1283791, %v233_v27  ;;  %v298_v43 = vor.u32 1.1754944e-38, %v297_v30 }
  0xc7   :  { %v324_v24 = vmul.f32 %v323_v20, %v617_v13  ;;  %v257_v44 = vand.u32 2147483648, %v245_v9  ;;  %v312_v62 = vadd.f32 0.18741608, %v311_v31  ;;  %vm296_vm10 = vcmp.eq.f32.partialorder %v295_v36, 8.507059e+37 }
  0xc8   :  { %v209_v8 = vmul.f32 %v474_v53, %v208_v63  ;;  %v255_v48 = vand.u32 2147483647, %v245_v9  ;;  %v275_v51 = vmul.f32 %v274_v34, %v587_v46  ;;  %vm251_vm12 = vweird.f32 %v245_v9 }
  0xc9   :  { %v476_v11 = vpop.eup %475  ;;  %v325_v32 = vadd.f32 1.0, %v324_v24  ;;  %v235_v56 = vmul.f32 %v234_v39, %v592_v50  ;;  %v258_v57 = vor.u32 1.1754944e-38, %v257_v44  ;;  %v313_v58 = vmul.f32 %v312_v62, %v617_v13  ;;  %v471_v50 = vld [vmem:[%s670_s3] ss:$0 sm:$0xff] }
  0xca   :  { %v210_v40 = vadd.f32 %v474_v53, %v209_v8  ;;  %v287_v16 = vmul.f32 %v476_v11, %v285_v52  ;;  %vm292_vm7 = vweird.f32 %v476_v11  ;;  %vm256_vm14 = vcmp.eq.f32.partialorder %v255_v48, 8.507059e+37 }
  0xcb   :  { %vm293_vm9 = vmor %vm291_vm8, %vm292_vm7  ;;  %479 = vrcp.f32 %v325_v32  ;;  %v314_v5 = vadd.f32 1.1283791, %v313_v58  ;;  %v335_v6 = vand.u32 2147483647, %v325_v32  ;;  %v337_v7 = vand.u32 2147483648, %v325_v32 }
  0xcc   :  { %v214_v18 = vsel %vm213_vm5, %v474_v53, %v210_v40  ;;  %v288_v22 = vsub.f32 1.0, %v287_v16  ;;  %v478_v28 = vpop.eup %477  ;;  %v176_v10 = vmul.f32 0.5, %v584_v45  ;;  %vm331_vm0 = vweird.f32 %v325_v32 }
  0xcd   :  { %v219_v21 = vsel %vm216_vm6, %v218_v14, %v214_v18  ;;  %v247_v37 = vmul.f32 %v478_v28, %v245_v9  ;;  %vm252_vm11 = vweird.f32 %v478_v28  ;;  %v315_v33 = vmul.f32 %v314_v5, %v608_v1 }
  0xce   :  { %v289_v26 = vmul.f32 %v476_v11, %v288_v22  ;;  %v220_v29 = vmul.f32 %v219_v21, %v195_v23  ;;  %vm253_vm13 = vmor %vm251_vm12, %vm252_vm11  ;;  %vm336_vm2 = vcmp.eq.f32.partialorder %v335_v6, 8.507059e+37  ;;  %v338_v40 = vor.u32 1.1754944e-38, %v337_v7 }
  0xcf   :  { %v248_v55 = vsub.f32 1.0, %v247_v37  ;;  %v177_v20 = vmul.f32 0.5, %v580_v41 }
  0xd0   :  { %v290_v35 = vadd.f32 %v476_v11, %v289_v26  ;;  %v433_v42 = vclamps-f32 %v220_v29, 1.0  ;;  %v178_v26 = vmul.f32 0.5, %v600_v59 }
  0xd1   :  { %v249_v47 = vmul.f32 %v478_v28, %v248_v55  ;;  %v480_v52 = vpop.eup %479 }
  0xd2   :  { %v294_v38 = vsel %vm293_vm9, %v476_v11, %v290_v35  ;;  %v343_v54 = vadd.f32 1.0, %v433_v42  ;;  %v327_v63 = vmul.f32 %v480_v52, %v325_v32  ;;  %vm332_vm15 = vweird.f32 %v480_v52 }
  0xd3   :  { %v299_v49 = vsel %vm296_vm10, %v298_v43, %v294_v38  ;;  %v250_v53 = vadd.f32 %v478_v28, %v249_v47  ;;  %vm333_vm1 = vmor %vm331_vm0, %vm332_vm15 }
  0xd4   :  { %v300_v60 = vmul.f32 %v299_v49, %v275_v51  ;;  %v328_v4 = vsub.f32 1.0, %v327_v63  ;;  %v347_v46 = vmul.f32 %v343_v54, %v175_v0 }
  0xd5   :  { %v254_v61 = vsel %vm253_vm13, %v478_v28, %v250_v53 }
  0xd6   :  { %v259_v2 = vsel %vm256_vm14, %v258_v57, %v254_v61  ;;  %v435_v8 = vclamps-f32 %v300_v60, 1.0  ;;  %v329_v13 = vmul.f32 %v480_v52, %v328_v4  ;;  %v355_v14 = vmul.f32 %v471_v50, %v347_v46 }
  0xd7   :  { %v260_v3 = vmul.f32 %v259_v2, %v235_v56 }
  0xd8   :  { %v330_v12 = vadd.f32 %v480_v52, %v329_v13  ;;  %v345_v16 = vadd.f32 1.0, %v435_v8  ;;  %v363_v22 = vadd.f32 %v472_v15, %v355_v14 }
  0xd9   :  { %v434_v9 = vclamps-f32 %v260_v3, 1.0 }
  0xda   :  { %v334_v18 = vsel %vm333_vm1, %v480_v52, %v330_v12  ;;  %v349_v23 = vmul.f32 %v345_v16, %v177_v20 }
  0xdb   :  { %v344_v11 = vadd.f32 1.0, %v434_v9  ;;  %v339_v19 = vsel %vm336_vm2, %v338_v40, %v334_v18 }
  0xdc   :  { %v340_v21 = vmul.f32 %v339_v19, %v315_v33  ;;  %v357_v28 = vmul.f32 %v471_v50, %v349_v23 }
  0xdd   :  { %v348_v17 = vmul.f32 %v344_v11, %v176_v10 }
  0xde   :  { %v436_v1 = vclamps-f32 %v340_v21, 1.0  ;;  %v365_v31 = vadd.f32 %v472_v15, %v357_v28 }
  0xdf   :  { %v356_v45 = vmul.f32 %v471_v50, %v348_v17 }
  0xe0   :  { %v346_v27 = vadd.f32 1.0, %v436_v1 }
  0xe1   :  { %v364_v24 = vadd.f32 %v472_v15, %v356_v45 }
  0xe2   :  { %v350_v29 = vmul.f32 %v346_v27, %v178_v26 }
  0xe3   :  { %v453_v25 = vpack.c.bf16 %v364_v24, %v363_v22 }
  0xe4   :  { %v358_v30 = vmul.f32 %v471_v50, %v350_v29 }
  0xe5   :  { %454 = vst [vmem:[%s672_s5] sm:$0xff] %v453_v25  }
  0xe6   :  { %v366_v32 = vadd.f32 %v472_v15, %v358_v30 }
  0xe8   :  { %v458_v41 = vpack.c.bf16 %v366_v32, %v365_v31 }
  0xea   :  { %460 = vst [vmem:[%s672_s5 + $0x8] sm:$0xff] %v458_v41  }

// kernel: convmixer_forward.4
= control target key start
LH: loop header
LB: loop body
LE: loop exit
PB: predicated region body
PF: predicated region fallthrough
CT: control target
= control target key end

     0   :  { %s1662_s0 = inlined_call_operand.vmem [shape: bf16[2,4,4,128], index: 0, kind: input, shape index: {}]   ;;  %s1663_s1 = inlined_call_operand.vmem [shape: f32[9,128], index: 1, kind: input, shape index: {}]   ;;  %s1664_s2 = inlined_call_operand.vmem [shape: f32[1,128], index: 2, kind: input, shape index: {}]   ;;  %s1665_s3 = inlined_call_operand.vmem [shape: f32[1,128], index: 3, kind: input, shape index: {}]   ;;  %s1666_s4 = inlined_call_operand.vmem [shape: f32[1,128], index: 4, kind: input, shape index: {}]   ;;  %s1667_s5 = inlined_call_operand.vmem [shape: bf16[128,128], index: 5, kind: input, shape index: {}]   ;;  %s1668_s6 = inlined_call_operand.vmem [shape: f32[1,128], index: 6, kind: input, shape index: {}]   ;;  %s1669_s7 = inlined_call_operand.vmem [shape: f32[1,128], index: 7, kind: input, shape index: {}]   ;;  %s1670_s8 = inlined_call_operand.vmem [shape: f32[1,128], index: 8, kind: input, shape index: {}]   ;;  %s1671_s9 = inlined_call_operand.vmem [shape: bf16[2,16,128], index: 9, kind: output, shape index: {0}]   ;;  %s1672_s10 = inlined_call_operand.hbm [shape: f32[2,1,128], index: 10, kind: output, shape index: {1}]  }
   0x1   :  { %1673 = sst [smem:[#allocation7_spill]] %s1662_s0 }
   0x2   :  { %16 = vsyncpa [#allocation5], 0 }
   0x3   :  { %18 = vsyncpa [#allocation5 + $0x1], 0  ;;  %s1299_s13 = smov 0   ;;  %s1301_s14 = smov 0  }
   0x4   :  { %s1303_s15 = smov 0   ;;  %s1305_s16 = smov 0  }
   0x5 LB: > { %s1320_s17 = sadd.s32 4294967295, %s1241_s16   ;;  %s1057_s18 = sadd.s32 4294967294, %s1241_s16   ;;  %s1241_s16 = sphi %s1305_s16, %s1690_s16   ;;  %s1237_s15 = sphi %s1303_s15, %s1689_s15   ;;  %s1233_s14 = sphi %s1301_s14, %s1688_s14   ;;  %s1229_s13 = sphi %s1299_s13, %s1687_s13  }
   0x6   : > { %s1324_s19 = sadd.s32 1, %s1241_s16   ;;  %s251_s20 = sadd.s32 1, %s1237_s15 }
   0x7   : > { %s248_s21 = ssub.s32 %s1241_s16, %s1324_s19  ;;  %p261_p0 = scmp.ne.s32.totalorder %s1237_s15, %s1233_s14 }
   0x8   : > { %p249_p1 = scmp.eq.s32.totalorder %s248_s21, 0  ;;  %p262_p2 = scmp.eq.s32.totalorder %s1320_s17, 1 }
   0x9   : > { %p267_p3 = scmp.ne.s32.totalorder %s1233_s14, %s1229_s13  ;;  %p268_p4 = scmp.eq.s32.totalorder %s1057_s18, 1 }
   0xa   : > { %s1335_s22 = scalar_select %p249_p1, %s1237_s15, %s251_s20  }
   0xb   : > { %p1337_p5 = por %p262_p2, %p261_p0  ;;  %p1341_p6 = por %p268_p4, %p267_p3 }
   0xc   : > { %p1060_p7 = scmp.ge.s32.totalorder %s1241_s16, 1  ;;  %p318_p8 = scmp.lt.s32.totalorder %s1241_s16, 3 }
   0xe   : > { %p319_p9 = pnand %p1060_p7, %p318_p8 }
   0xf   : > { %p360_p10 = scmp.lt.s32.totalorder (!%p319_p9), %s1320_s17, 1  ;;  %s1676_s0 = sld [smem:[#allocation7_spill]] (!%p319_p9) }
  0x10   : > { %322 = sbr.rel (%p319_p9) target bundleno = 343 (0x157), region = 56  ;;  %s358_s27 = sand.u32 (!%p319_p9), 1, %s1233_s14  }
  0x11   : > { %s973_s11 = scalar_lea.hbm (!%p319_p9), %s1672_s10, %s1320_s17  ;;  %s359_s18 = scalar_lea.vmem (!%p319_p9), [#allocation4], %s358_s27 }
  0x12   : > { %s977_s20 = sshll.u32 (!%p319_p9), %s973_s11, 4  ;;  %s978_s20 = int_to_ptr.hbm [resolvable:$true] %s977_s20 }
  0x13   : > { %s1193_s21 = sshra.s32 (!%p319_p9), %s978_s20, 4  ;;  %s1194_s21 = int_to_ptr.hbm [resolvable:$true] %s1193_s21 }
  0x14   : > { %s1195_s25 = scalar_lea.hbm (!%p319_p9), %s1194_s21, 1  ;;  %p1200_p0 = scmp.lt.s32.totalorder (!%p319_p9), %s1194_s21, %s1672_s10 }
  0x15   : > { %v1114_v0 = vld [vmem:[%s1667_s5 + $0x38] sm:$0xff]  ;;  %v1243_v1 = vmov 0.0   ;;  %v1113_v2 = vld [vmem:[%s1667_s5 + $0x30] sm:$0xff]  ;;  %s1355_s29 = scalar_select %p360_p10, %s1320_s17, 1  ;;  %v395_v3 = vld [vmem:[%s1663_s1] sm:$0xff] }
  0x16   : > { %378 = vst [vmem:[#allocation2] sm:$0x3f] %v1243_v1  ;;  %829 = vmatpush.bf16.msra.mxu0 %v1114_v0  ;;  %v1112_v4 = vld [vmem:[%s1667_s5 + $0x28] sm:$0xff]  ;;  %v397_v5 = vperm.slane %v395_v3, 0  ;;  %v406_v6 = vperm.slane %v395_v3, 1  ;;  %v427_v7 = vperm.slane %v395_v3, 2  ;;  %p1196_p11 = scmp.ne.s32.totalorder %s1194_s21, %s1195_s25 }
  0x17   : > { %379 = vst [vmem:[#allocation2 + $0x8] sm:$0x3f] %v1243_v1  ;;  %s1105_s12 = sshll.u32 %s1355_s29, 3  ;;  %v1111_v15 = vld [vmem:[%s1667_s5 + $0x20] sm:$0xff]  ;;  %v1390_v22 = vperm.slane %v395_v3, 6  ;;  %v1394_v24 = vperm.slane %v395_v3, 7 }
  0x18   : > { %380 = vst [vmem:[#allocation2 + $0x10] sm:$0x3f] %v1243_v1  ;;  %s364_s26 = scalar_lea.vmem %s1676_s0, %s1105_s12  ;;  %v1399_v25 = vld [vmem:[%s1663_s1 + $0x8] ss:$0 sm:$0xff]  ;;  %v448_v27 = vperm.slane %v395_v3, 3  ;;  %v1110_v28 = vld [vmem:[%s1667_s5 + $0x18] sm:$0xff]  ;;  %p1197_p12 = pnand %p1196_p11, %p1337_p5 }
  0x19   : > { %381 = vst [vmem:[#allocation2 + $0x18] sm:$0x3f] %v1243_v1  ;;  %v1369_v8 = vld [vmem:[%s364_s26] sm:$0x3]  ;;  %v1371_v9 = vld [vmem:[%s364_s26 + $0x2] sm:$0x3] }
  0x1a   : > { %382 = vst [vmem:[#allocation2 + $0x20] sm:$0x3f] %v1243_v1  ;;  %830 = vmatpush.bf16.msra.mxu0 %v1113_v2  ;;  %v1373_v10 = vld [vmem:[%s364_s26 + $0x4] sm:$0x3]  ;;  %v1375_v11 = vld [vmem:[%s364_s26 + $0x6] sm:$0x3]  ;;  %v374_v12 = vunpack.c.l.bf16 %v1369_v8  ;;  %v375_v13 = vunpack.c.l.bf16 %v1371_v9  ;;  %s369_s26 = scalar_lea.vmem %s1671_s9, %s1105_s12  ;;  %p1198_p13 = pneg %p1197_p12 }
  0x1b   : > { %v376_v14 = vunpack.c.l.bf16 %v1373_v10  ;;  %383 = vst [vmem:[#allocation2 + $0x28] sm:$0x3f] %v1243_v1  ;;  %v377_v16 = vunpack.c.l.bf16 %v1375_v11  ;;  %v457_v30 = vperm.slane %v395_v3, 4  ;;  %v478_v31 = vperm.slane %v395_v3, 5  ;;  %v1109_v42 = vld [vmem:[%s1667_s5 + $0x10] sm:$0xff]  ;;  %v1108_v61 = vld [vmem:[%s1667_s5 + $0x8] sm:$0xff] }
  0x1c   : > { %385 = vst [vmem:[#allocation2 + $0x9] sm:$0xf] %v374_v12  ;;  %v1164_v9 = vld [vmem:[%s1668_s6] ss:$0 sm:$0xff]  ;;  %s975_s29 = sshll.u32 %s359_s18, 4  ;;  %s962_s12 = scalar_lea.sflag [#allocation5], %s358_s27  ;;  %s976_s29 = int_to_ptr.vmem [resolvable:$true] %s975_s29 }
  0x1d   : > { %v389_v17 = vld [vmem:[#allocation2] sm:$0x3f]  ;;  %386 = vst [vmem:[#allocation2 + $0x11] sm:$0xf] %v375_v13  ;;  %s1199_s17 = scalar_lea.hbm %s1672_s10, 2 }
  0x1e   : > { %v398_v18 = vmul.f32 %v397_v5, %v389_v17  ;;  %v407_v19 = vmul.f32 %v406_v6, %v389_v17  ;;  %v428_v20 = vmul.f32 %v427_v7, %v389_v17  ;;  %831 = vmatpush.bf16.msra.mxu0 %v1112_v4  ;;  %387 = vst [vmem:[#allocation2 + $0x19] sm:$0xf] %v376_v14  ;;  %p1201_p1 = scmp.lt.s32.totalorder %s1199_s17, %s1195_s25 }
  0x1f   : > { %388 = vst [vmem:[#allocation2 + $0x21] sm:$0xf] %v377_v16 }
  0x20   : > { %v415_v21 = vrot.slane %v407_v19, 1  ;;  %v436_v23 = vrot.slane %v428_v20, 2  ;;  %p1202_p2 = por %p1201_p1, %p1200_p0 }
  0x22   : > { %v423_v26 = vadd.f32 %v415_v21, %v398_v18  ;;  %832 = vmatpush.bf16.msra.mxu0 %v1111_v15  ;;  %v394_v29 = vld [vmem:[#allocation2 + $0x28] sm:$0x3f]  ;;  %p1203_p3 = pnand %p1202_p2, %p1198_p13 }
  0x23   : > { %v390_v32 = vld [vmem:[#allocation2 + $0x8] sm:$0x3f]  ;;  %v1405_v34 = vmul.f32 %v1390_v22, %v394_v29  ;;  %v1408_v35 = vmul.f32 %v1394_v24, %v394_v29  ;;  %v1411_v36 = vmul.f32 %v1399_v25, %v394_v29 }
  0x24   : > { %v444_v33 = vadd.f32 %v436_v23, %v423_v26  ;;  %v1413_v37 = vld [vmem:[#allocation2 + $0x10] sm:$0x3f]  ;;  %v399_v38 = vmul.f32 %v397_v5, %v390_v32  ;;  %v408_v39 = vmul.f32 %v406_v6, %v390_v32  ;;  %v429_v40 = vmul.f32 %v427_v7, %v390_v32  ;;  %v1107_v23 = vld [vmem:[%s1667_s5] sm:$0xff] }
  0x25   : > { %v449_v41 = vmul.f32 %v448_v27, %v390_v32  ;;  %v1418_v43 = vld [vmem:[#allocation2 + $0x18] sm:$0x3f]  ;;  %v400_v44 = vmul.f32 %v397_v5, %v1413_v37  ;;  %v409_v45 = vmul.f32 %v406_v6, %v1413_v37  ;;  %v430_v46 = vmul.f32 %v427_v7, %v1413_v37 }
  0x26   : > { %833 = vmatpush.bf16.msra.mxu0 %v1110_v28  ;;  %v450_v47 = vmul.f32 %v448_v27, %v1413_v37  ;;  %v1424_v48 = vld [vmem:[#allocation2 + $0x20] sm:$0x3f]  ;;  %v401_v49 = vmul.f32 %v397_v5, %v1418_v43  ;;  %v410_v50 = vmul.f32 %v406_v6, %v1418_v43  ;;  %v416_v51 = vrot.slane %v408_v39, 1 }
  0x27   : > { %v431_v52 = vmul.f32 %v427_v7, %v1418_v43  ;;  %v417_v53 = vrot.slane %v409_v45, 1  ;;  %v437_v54 = vrot.slane %v429_v40, 2  ;;  %v438_v55 = vrot.slane %v430_v46, 2 }
  0x28   : > { %v451_v56 = vmul.f32 %v448_v27, %v1418_v43  ;;  %v418_v57 = vrot.slane %v410_v50, 1  ;;  %v424_v58 = vadd.f32 %v416_v51, %v399_v38  ;;  %v452_v60 = vmul.f32 %v448_v27, %v1424_v48 }
  0x29   : > { %v439_v59 = vrot.slane %v431_v52, 2  ;;  %v425_v62 = vadd.f32 %v417_v53, %v400_v44  ;;  %v453_v63 = vadd.f32 %v449_v41, %v444_v33  ;;  %v458_v0 = vmul.f32 %v457_v30, %v390_v32 }
  0x2a   : > { %834 = vmatpush.bf16.msra.mxu0 %v1109_v42  ;;  %v459_v1 = vmul.f32 %v457_v30, %v1413_v37  ;;  %v426_v2 = vadd.f32 %v418_v57, %v401_v49  ;;  %v445_v3 = vadd.f32 %v437_v54, %v424_v58  ;;  %v460_v4 = vmul.f32 %v457_v30, %v1418_v43 }
  0x2b   : > { %v461_v5 = vmul.f32 %v457_v30, %v1424_v48  ;;  %v446_v6 = vadd.f32 %v438_v55, %v425_v62  ;;  %v466_v7 = vrot.slane %v458_v0, 1  ;;  %v479_v17 = vmul.f32 %v478_v31, %v390_v32 }
  0x2c   : > { %v467_v15 = vrot.slane %v459_v1, 1  ;;  %v447_v18 = vadd.f32 %v439_v59, %v426_v2  ;;  %v454_v19 = vadd.f32 %v450_v47, %v445_v3  ;;  %v468_v20 = vrot.slane %v460_v4, 1 }
  0x2d   : > { %v469_v21 = vrot.slane %v461_v5, 1  ;;  %v455_v26 = vadd.f32 %v451_v56, %v446_v6  ;;  %v474_v27 = vadd.f32 %v466_v7, %v453_v63  ;;  %v480_v28 = vmul.f32 %v478_v31, %v1413_v37 }
  0x2e   : > { %835 = vmatpush.bf16.msra.mxu0 %v1108_v61  ;;  %v481_v29 = vmul.f32 %v478_v31, %v1418_v43  ;;  %v456_v30 = vadd.f32 %v452_v60, %v447_v18  ;;  %v475_v33 = vadd.f32 %v467_v15, %v454_v19  ;;  %v482_v38 = vmul.f32 %v478_v31, %v1424_v48 }
  0x2f   : > { %v487_v32 = vrot.slane %v479_v17, 2  ;;  %v476_v39 = vadd.f32 %v468_v20, %v455_v26  ;;  %v488_v40 = vrot.slane %v480_v28, 2  ;;  %v500_v42 = vmul.f32 %v1390_v22, %v1413_v37 }
  0x30   : > { %v489_v41 = vrot.slane %v481_v29, 2  ;;  %v477_v44 = vadd.f32 %v469_v21, %v456_v30  ;;  %v490_v45 = vrot.slane %v482_v38, 2  ;;  %v501_v47 = vmul.f32 %v1390_v22, %v1418_v43 }
  0x31   : > { %v495_v46 = vadd.f32 %v487_v32, %v474_v27  ;;  %v496_v49 = vadd.f32 %v488_v40, %v475_v33  ;;  %v502_v51 = vmul.f32 %v1390_v22, %v1424_v48  ;;  %v509_v31 = vmul.f32 %v1394_v24, %v1413_v37 }
  0x32   : > { %836 = vmatpush.bf16.msra.mxu0 %v1107_v23  ;;  %v497_v50 = vadd.f32 %v489_v41, %v476_v39  ;;  %v498_v52 = vadd.f32 %v490_v45, %v477_v44  ;;  %v510_v54 = vmul.f32 %v1394_v24, %v1418_v43  ;;  %v511_v55 = vmul.f32 %v1394_v24, %v1424_v48 }
  0x33   : > { %v504_v53 = vadd.f32 %v500_v42, %v495_v46  ;;  %v505_v56 = vadd.f32 %v501_v47, %v496_v49  ;;  %v517_v58 = vrot.slane %v509_v31, 1  ;;  %v520_v59 = vrot.slane %v1408_v35, 1 }
  0x34   : > { %v506_v57 = vadd.f32 %v502_v51, %v497_v50  ;;  %v507_v60 = vadd.f32 %v1405_v34, %v498_v52  ;;  %v518_v61 = vrot.slane %v510_v54, 1  ;;  %v519_v22 = vrot.slane %v511_v55, 1  ;;  %v1161_v34 = vld [vmem:[%s1664_s2] ss:$0 sm:$0xff] }
  0x35   : > { %v530_v62 = vmul.f32 %v1399_v25, %v1413_v37  ;;  %v525_v63 = vadd.f32 %v517_v58, %v504_v53  ;;  %v531_v0 = vmul.f32 %v1399_v25, %v1418_v43  ;;  %v532_v1 = vmul.f32 %v1399_v25, %v1424_v48 }
  0x36   : > { %v541_v24 = vrot.slane %v1411_v36, 2  ;;  %v526_v2 = vadd.f32 %v518_v61, %v505_v56  ;;  %v527_v3 = vadd.f32 %v519_v22, %v506_v57  ;;  %v528_v4 = vadd.f32 %v520_v59, %v507_v60 }
  0x37   : > { %v538_v35 = vrot.slane %v530_v62, 2  ;;  %v539_v5 = vrot.slane %v531_v0, 2  ;;  %v540_v6 = vrot.slane %v532_v1, 2 }
  0x38   : > { %v549_v7 = vadd.f32 %v541_v24, %v528_v4 }
  0x39   : > { %v546_v37 = vadd.f32 %v538_v35, %v525_v63  ;;  %v547_v15 = vadd.f32 %v539_v5, %v526_v2  ;;  %v548_v17 = vadd.f32 %v540_v6, %v527_v3 }
  0x3a   : > { %v1469_v18 = vadd.f32 %v1161_v34, %v549_v7 }
  0x3b   : > { %v1467_v43 = vadd.f32 %v1161_v34, %v546_v37  ;;  %v1471_v25 = vadd.f32 %v1161_v34, %v547_v15  ;;  %v1473_v36 = vadd.f32 %v1161_v34, %v548_v17 }
  0x3c   : > { %v1479_v19 = vmul.f32 0.70710677, %v1469_v18 }
  0x3d   : > { %v1476_v48 = vmul.f32 0.70710677, %v1467_v43  ;;  %v1482_v20 = vmul.f32 0.70710677, %v1471_v25  ;;  %v1485_v21 = vmul.f32 0.70710677, %v1473_v36 }
  0x3e   : > { %v686_v26 = vmul.f32 %v1479_v19, %v1479_v19 }
  0x3f   : > { %v566_v23 = vmul.f32 %v1476_v48, %v1476_v48  ;;  %v606_v27 = vmul.f32 %v1482_v20, %v1482_v20  ;;  %v646_v28 = vmul.f32 %v1485_v21, %v1485_v21 }
  0x40   : > { %v1497_v30 = vmin.f32 %v686_v26, 16.0 }
  0x41   : > { %v1495_v29 = vmin.f32 %v566_v23, 16.0  ;;  %v1499_v33 = vmin.f32 %v606_v27, 16.0  ;;  %v1501_v38 = vmin.f32 %v646_v28, 16.0 }
  0x42   : > { %v688_v40 = vmul.f32 2.1237322e-06, %v1497_v30  ;;  %v699_v58 = vmul.f32 3.8918573e-05, %v1497_v30 }
  0x43   : > { %v568_v32 = vmul.f32 2.1237322e-06, %v1495_v29  ;;  %v579_v39 = vmul.f32 3.8918573e-05, %v1495_v29  ;;  %v608_v41 = vmul.f32 2.1237322e-06, %v1499_v33 }
  0x44   : > { %v619_v42 = vmul.f32 3.8918573e-05, %v1499_v33  ;;  %v648_v44 = vmul.f32 2.1237322e-06, %v1501_v38  ;;  %v659_v47 = vmul.f32 3.8918573e-05, %v1501_v38 }
  0x45   : > { %v569_v45 = vadd.f32 0.00028619796, %v568_v32  ;;  %v580_v46 = vadd.f32 0.001143296, %v579_v39  ;;  %v609_v49 = vadd.f32 0.00028619796, %v608_v41 }
  0x46   : > { %v620_v50 = vadd.f32 0.001143296, %v619_v42  ;;  %v649_v51 = vadd.f32 0.00028619796, %v648_v44  ;;  %v660_v53 = vadd.f32 0.001143296, %v659_v47 }
  0x47   : > { %v570_v31 = vmul.f32 %v569_v45, %v1495_v29  ;;  %v581_v52 = vmul.f32 %v580_v46, %v1495_v29  ;;  %v689_v54 = vadd.f32 0.00028619796, %v688_v40  ;;  %v610_v55 = vmul.f32 %v609_v49, %v1499_v33 }
  0x48   : > { %v621_v56 = vmul.f32 %v620_v50, %v1499_v33  ;;  %v650_v57 = vmul.f32 %v649_v51, %v1501_v38  ;;  %v661_v61 = vmul.f32 %v660_v53, %v1501_v38  ;;  %v700_v5 = vadd.f32 0.001143296, %v699_v58 }
  0x49   : > { %v571_v59 = vadd.f32 0.0036580483, %v570_v31  ;;  %v582_v60 = vadd.f32 0.014752088, %v581_v52  ;;  %v690_v22 = vmul.f32 %v689_v54, %v1497_v30  ;;  %v611_v62 = vadd.f32 0.0036580483, %v610_v55 }
  0x4a   : > { %v622_v63 = vadd.f32 0.014752088, %v621_v56  ;;  %v651_v0 = vadd.f32 0.0036580483, %v650_v57  ;;  %v662_v2 = vadd.f32 0.014752088, %v661_v61  ;;  %v701_v27 = vmul.f32 %v700_v5, %v1497_v30 }
  0x4b   : > { %v572_v1 = vmul.f32 %v571_v59, %v1495_v29  ;;  %v583_v24 = vmul.f32 %v582_v60, %v1495_v29  ;;  %v691_v3 = vadd.f32 0.0036580483, %v690_v22  ;;  %v612_v4 = vmul.f32 %v611_v62, %v1499_v33 }
  0x4c   : > { %v623_v35 = vmul.f32 %v622_v63, %v1499_v33  ;;  %v652_v34 = vmul.f32 %v651_v0, %v1501_v38  ;;  %v663_v7 = vmul.f32 %v662_v2, %v1501_v38  ;;  %v702_v41 = vadd.f32 0.014752088, %v701_v27 }
  0x4d   : > { %v573_v6 = vadd.f32 0.05243302, %v572_v1  ;;  %v584_v37 = vadd.f32 0.112945676, %v583_v24  ;;  %v692_v15 = vmul.f32 %v691_v3, %v1497_v30  ;;  %v613_v17 = vadd.f32 0.05243302, %v612_v4 }
  0x4e   : > { %v624_v23 = vadd.f32 0.112945676, %v623_v35  ;;  %v653_v26 = vadd.f32 0.05243302, %v652_v34  ;;  %v664_v32 = vadd.f32 0.112945676, %v663_v7  ;;  %v703_v50 = vmul.f32 %v702_v41, %v1497_v30 }
  0x4f   : > { %v585_v28 = vmul.f32 %v584_v37, %v1495_v29  ;;  %v574_v39 = vmul.f32 %v573_v6, %v1495_v29  ;;  %v614_v44 = vmul.f32 %v613_v17, %v1499_v33  ;;  %v693_v46 = vadd.f32 0.05243302, %v692_v15 }
  0x50   : > { %v625_v40 = vmul.f32 %v624_v23, %v1499_v33  ;;  %v665_v45 = vmul.f32 %v664_v32, %v1501_v38  ;;  %v654_v49 = vmul.f32 %v653_v26, %v1501_v38  ;;  %v704_v53 = vadd.f32 0.112945676, %v703_v50 }
  0x51   : > { %v586_v42 = vadd.f32 0.4994258, %v585_v28  ;;  %v575_v54 = vadd.f32 0.18741608, %v574_v39  ;;  %v615_v56 = vadd.f32 0.18741608, %v614_v44  ;;  %v694_v57 = vmul.f32 %v693_v46, %v1497_v30 }
  0x52   : > { %v626_v47 = vadd.f32 0.4994258, %v625_v40  ;;  %v666_v31 = vadd.f32 0.4994258, %v665_v45  ;;  %v655_v59 = vadd.f32 0.18741608, %v654_v49  ;;  %v705_v61 = vmul.f32 %v704_v53, %v1497_v30 }
  0x53   : > { %v587_v51 = vmul.f32 %v586_v42, %v1495_v29  ;;  %v576_v22 = vmul.f32 %v575_v54, %v1495_v29  ;;  %v695_v62 = vadd.f32 0.18741608, %v694_v57  ;;  %v616_v63 = vmul.f32 %v615_v56, %v1499_v33 }
  0x54   : > { %v627_v52 = vmul.f32 %v626_v47, %v1499_v33  ;;  %v667_v60 = vmul.f32 %v666_v31, %v1501_v38  ;;  %v656_v0 = vmul.f32 %v655_v59, %v1501_v38  ;;  %v706_v24 = vadd.f32 0.4994258, %v705_v61 }
  0x55   : > { %v588_v55 = vadd.f32 1.0, %v587_v51  ;;  %v577_v3 = vadd.f32 1.1283791, %v576_v22  ;;  %v696_v4 = vmul.f32 %v695_v62, %v1497_v30  ;;  %v617_v37 = vadd.f32 1.1283791, %v616_v63 }
  0x56   : > { %v628_v58 = vadd.f32 1.0, %v627_v52  ;;  %v668_v1 = vadd.f32 1.0, %v667_v60  ;;  %v707_v35 = vmul.f32 %v706_v24, %v1497_v30  ;;  %v657_v7 = vadd.f32 1.1283791, %v656_v0 }
  0x57   : > { %1167 = vrcp.f32 %v588_v55  ;;  %v598_v6 = vand.u32 2147483647, %v588_v55  ;;  %vm594_vm0 = vweird.f32 %v588_v55  ;;  %v600_v29 = vand.u32 2147483648, %v588_v55 }
  0x58   : > { %1169 = vrcp.f32 %v628_v58  ;;  %v1543_v33 = vadd.f32 1.0, %v707_v35  ;;  %v638_v17 = vand.u32 2147483647, %v628_v58  ;;  %v640_v23 = vand.u32 2147483648, %v628_v58 }
  0x59   : > { %1171 = vrcp.f32 %v668_v1  ;;  %vm634_vm2 = vweird.f32 %v628_v58  ;;  %v578_v27 = vmul.f32 %v577_v3, %v1476_v48  ;;  %vm1547_vm4 = vcmp.eq.f32.partialorder %v598_v6, 8.507059e+37  ;;  %v1162_v6 = vld [vmem:[%s1665_s3] ss:$0 sm:$0xff] }
  0x5a   : > { %1173 = vrcp.f32 %v1543_v33  ;;  %v618_v39 = vmul.f32 %v617_v37, %v1482_v20  ;;  %v601_v41 = vor.u32 1.1754944e-38, %v600_v29  ;;  %v678_v45 = vand.u32 2147483647, %v668_v1 }
  0x5b   : > { %vm1561_vm7 = vcmp.eq.f32.partialorder %v638_v17, 8.507059e+37  ;;  %v641_v49 = vor.u32 1.1754944e-38, %v640_v23  ;;  %v680_v20 = vand.u32 2147483648, %v668_v1  ;;  %vm674_vm8 = vweird.f32 %v668_v1 }
  0x5c   : > { %v558_v31 = vmul.f32 0.5, %v1467_v43  ;;  %v658_v53 = vmul.f32 %v657_v7, %v1485_v21  ;;  %v697_v54 = vadd.f32 1.1283791, %v696_v4  ;;  %vm1573_vm10 = vcmp.eq.f32.partialorder %v678_v45, 8.507059e+37 }
  0x5d   : > { %v1168_v2 = vpop.eup %1167  ;;  %v681_v61 = vor.u32 1.1754944e-38, %v680_v20  ;;  %vm714_vm12 = vweird.f32 %v1543_v33  ;;  %v720_v63 = vand.u32 2147483648, %v1543_v33  ;;  %v718_v24 = vand.u32 2147483647, %v1543_v33 }
  0x5e   : > { %v1170_v34 = vpop.eup %1169  ;;  %v590_v5 = vmul.f32 %v1168_v2, %v588_v55  ;;  %vm595_vm1 = vweird.f32 %v1168_v2  ;;  %v560_v17 = vmul.f32 0.5, %v1473_v36 }
  0x5f   : > { %v630_v15 = vmul.f32 %v1170_v34, %v628_v58  ;;  %vm635_vm3 = vweird.f32 %v1170_v34  ;;  %v1172_v30 = vpop.eup %1171  ;;  %vm1553_vm5 = vmor %vm594_vm0, %vm595_vm1  ;;  %v721_v7 = vor.u32 1.1754944e-38, %v720_v63  ;;  %vm719_vm15 = vcmp.eq.f32.partialorder %v718_v24, 8.507059e+37 }
  0x60   : > { %v591_v38 = vsub.f32 1.0, %v590_v5  ;;  %v670_v44 = vmul.f32 %v1172_v30, %v668_v1  ;;  %vm1557_vm6 = vmor %vm634_vm2, %vm635_vm3  ;;  %vm675_vm9 = vweird.f32 %v1172_v30  ;;  %v1174_v55 = vpop.eup %1173 }
  0x61   : > { %v631_v26 = vsub.f32 1.0, %v630_v15  ;;  %vm676_vm11 = vmor %vm674_vm8, %vm675_vm9  ;;  %v710_v21 = vmul.f32 %v1174_v55, %v1543_v33  ;;  %vm715_vm13 = vweird.f32 %v1174_v55  ;;  %v698_v15 = vmul.f32 %v697_v54, %v1479_v19 }
  0x62   : > { %v592_v28 = vmul.f32 %v1168_v2, %v591_v38  ;;  %v671_v51 = vsub.f32 1.0, %v670_v44  ;;  %vm716_vm14 = vmor %vm714_vm12, %vm715_vm13  ;;  %v1163_v38 = vld [vmem:[%s1666_s4] ss:$0 sm:$0xff]  ;;  %v561_v44 = vmul.f32 0.5, %v1469_v18 }
  0x63   : > { %v632_v42 = vmul.f32 %v1170_v34, %v631_v26  ;;  %v711_v1 = vsub.f32 1.0, %v710_v21 }
  0x64   : > { %v593_v46 = vadd.f32 %v1168_v2, %v592_v28  ;;  %v672_v58 = vmul.f32 %v1172_v30, %v671_v51 }
  0x65   : > { %v633_v50 = vadd.f32 %v1170_v34, %v632_v42 }
  0x66   : > { %v597_v52 = vsel %vm1553_vm5, %v1168_v2, %v593_v46  ;;  %v673_v62 = vadd.f32 %v1172_v30, %v672_v58  ;;  %v559_v2 = vmul.f32 0.5, %v1471_v25 }
  0x67   : > { %v602_v56 = vsel %vm1547_vm4, %v601_v41, %v597_v52  ;;  %v637_v57 = vsel %vm1557_vm6, %v1170_v34, %v633_v50  ;;  %v712_v34 = vmul.f32 %v1174_v55, %v711_v1 }
  0x68   : > { %v603_v60 = vmul.f32 %v602_v56, %v578_v27  ;;  %v642_v43 = vsel %vm1561_vm7, %v641_v49, %v637_v57  ;;  %v677_v4 = vsel %vm676_vm11, %v1172_v30, %v673_v62 }
  0x69   : > { %v643_v22 = vmul.f32 %v642_v43, %v618_v39  ;;  %v682_v35 = vsel %vm1573_vm10, %v681_v61, %v677_v4  ;;  %v713_v33 = vadd.f32 %v1174_v55, %v712_v34 }
  0x6a   : > { %v1065_v0 = vclamps-f32 %v603_v60, 1.0  ;;  %v683_v37 = vmul.f32 %v682_v35, %v658_v53 }
  0x6b   : > { %v1066_v3 = vclamps-f32 %v643_v22, 1.0  ;;  %v717_v30 = vsel %vm716_vm14, %v1174_v55, %v713_v33 }
  0x6c   : > { %v726_v5 = vadd.f32 1.0, %v1065_v0  ;;  %v1067_v23 = vclamps-f32 %v683_v37, 1.0  ;;  %v722_v28 = vsel %vm719_vm15, %v721_v7, %v717_v30 }
  0x6d   : > { %v727_v29 = vadd.f32 1.0, %v1066_v3  ;;  %v723_v40 = vmul.f32 %v722_v28, %v698_v15 }
  0x6e   : > { %v730_v25 = vmul.f32 %v726_v5, %v558_v31  ;;  %v728_v32 = vadd.f32 1.0, %v1067_v23 }
  0x6f   : > { %v731_v26 = vmul.f32 %v727_v29, %v559_v2  ;;  %v1068_v45 = vclamps-f32 %v723_v40, 1.0 }
  0x70   : > { %v738_v27 = vmul.f32 %v1162_v6, %v730_v25  ;;  %v732_v42 = vmul.f32 %v728_v32, %v560_v17 }
  0x71   : > { %v739_v39 = vmul.f32 %v1162_v6, %v731_v26  ;;  %v729_v48 = vadd.f32 1.0, %v1068_v45 }
  0x72   : > { %v746_v41 = vadd.f32 %v1163_v38, %v738_v27  ;;  %v740_v47 = vmul.f32 %v1162_v6, %v732_v42 }
  0x73   : > { %v747_v19 = vadd.f32 %v1163_v38, %v739_v39  ;;  %v733_v20 = vmul.f32 %v729_v48, %v561_v44 }
  0x74   : > { %v750_v46 = vadd.f32 %v746_v41, %v374_v12  ;;  %v748_v49 = vadd.f32 %v1163_v38, %v740_v47 }
  0x75   : > { %v751_v36 = vadd.f32 %v747_v19, %v375_v13  ;;  %v741_v51 = vmul.f32 %v1162_v6, %v733_v20 }
  0x76   : > { %754 = vst [vmem:[#allocation3] sm:$0xf] %v750_v46  ;;  %v752_v50 = vadd.f32 %v748_v49, %v376_v14 }
  0x77   : > { %755 = vst [vmem:[#allocation3 + $0x4] sm:$0xf] %v751_v36  ;;  %v749_v31 = vadd.f32 %v1163_v38, %v741_v51 }
  0x78   : > { %756 = vst [vmem:[#allocation3 + $0x8] sm:$0xf] %v752_v50 }
  0x79   : > { %v753_v18 = vadd.f32 %v749_v31, %v377_v16 }
  0x7b   : > { %757 = vst [vmem:[#allocation3 + $0xc] sm:$0xf] %v753_v18 }
  0x7e   : > { %v758_v8 = vld [vmem:[#allocation3] sm:$0xff] }
  0x82   : > { %v759_v12 = vld [vmem:[#allocation3 + $0x8] sm:$0xff] }
  0x83   : > { %v760_v52 = vpack.c.bf16 %v759_v12, %v758_v8 }
  0x85   : > { %837 = vmatmul.bf16.vlgmr.msra.gmra.mxu0 %v760_v52 }
 0x102   : > { %v838_v13 = vpop.f32.mrf.mxu0 }
 0x103   : > { %v1606_v53 = vadd.f32 %v1164_v9, %v838_v13 }
 0x105   : > { %v845_v10 = vmul.f32 0.70710677, %v1606_v53 }
 0x107   : > { %v847_v14 = vmul.f32 %v845_v10, %v845_v10 }
 0x109   : > { %v848_v54 = vmin.f32 %v847_v14, 16.0 }
 0x10a   : > { %v840_v55 = vpop.f32.mrf.mxu0 }
 0x10b   : > { %v849_v56 = vmul.f32 2.1237322e-06, %v848_v54  ;;  %v860_v11 = vmul.f32 3.8918573e-05, %v848_v54  ;;  %v1609_v16 = vadd.f32 %v1164_v9, %v840_v55 }
 0x10d   : > { %v850_v57 = vadd.f32 0.00028619796, %v849_v56  ;;  %v861_v58 = vadd.f32 0.001143296, %v860_v11  ;;  %v1612_v59 = vmul.f32 0.70710677, %v1609_v16 }
 0x10f   : > { %v851_v60 = vmul.f32 %v850_v57, %v848_v54  ;;  %v862_v43 = vmul.f32 %v861_v58, %v848_v54  ;;  %v887_v61 = vmul.f32 %v1612_v59, %v1612_v59 }
 0x111   : > { %v852_v21 = vadd.f32 0.0036580483, %v851_v60  ;;  %v863_v22 = vadd.f32 0.014752088, %v862_v43  ;;  %v888_v62 = vmin.f32 %v887_v61, 16.0  ;;  %v843_v61 = vmul.f32 0.5, %v1606_v53 }
 0x113   : > { %v864_v63 = vmul.f32 %v863_v22, %v848_v54  ;;  %v889_v0 = vmul.f32 2.1237322e-06, %v888_v62  ;;  %v900_v1 = vmul.f32 3.8918573e-05, %v888_v62  ;;  %v853_v24 = vmul.f32 %v852_v21, %v848_v54 }
 0x115   : > { %v865_v2 = vadd.f32 0.112945676, %v864_v63  ;;  %v890_v3 = vadd.f32 0.00028619796, %v889_v0  ;;  %v901_v4 = vadd.f32 0.001143296, %v900_v1 }
 0x116   : > { %v854_v6 = vadd.f32 0.05243302, %v853_v24  ;;  %v844_v0 = vmul.f32 0.5, %v1609_v16 }
 0x117   : > { %v866_v35 = vmul.f32 %v865_v2, %v848_v54  ;;  %v891_v34 = vmul.f32 %v890_v3, %v888_v62  ;;  %v902_v5 = vmul.f32 %v901_v4, %v888_v62 }
 0x118   : > { %v855_v25 = vmul.f32 %v854_v6, %v848_v54 }
 0x119   : > { %v867_v37 = vadd.f32 0.4994258, %v866_v35  ;;  %v892_v7 = vadd.f32 0.0036580483, %v891_v34  ;;  %v903_v29 = vadd.f32 0.014752088, %v902_v5 }
 0x11a   : > { %v856_v30 = vadd.f32 0.18741608, %v855_v25 }
 0x11b   : > { %v868_v15 = vmul.f32 %v867_v37, %v848_v54  ;;  %v904_v33 = vmul.f32 %v903_v29, %v888_v62  ;;  %v893_v17 = vmul.f32 %v892_v7, %v888_v62 }
 0x11c   : > { %v857_v40 = vmul.f32 %v856_v30, %v848_v54 }
 0x11d   : > { %v869_v38 = vadd.f32 1.0, %v868_v15  ;;  %v905_v23 = vadd.f32 0.112945676, %v904_v33  ;;  %v894_v27 = vadd.f32 0.05243302, %v893_v17 }
 0x11e   : > { %v858_v45 = vadd.f32 1.1283791, %v857_v40 }
 0x11f   : > { %1175 = vrcp.f32 %v869_v38  ;;  %v906_v26 = vmul.f32 %v905_v23, %v888_v62  ;;  %v895_v42 = vmul.f32 %v894_v27, %v888_v62  ;;  %v881_v46 = vand.u32 2147483648, %v869_v38 }
 0x120   : > { %v879_v36 = vand.u32 2147483647, %v869_v38  ;;  %vm875_vm1 = vweird.f32 %v869_v38  ;;  %v859_v51 = vmul.f32 %v858_v45, %v845_v10 }
 0x121   : > { %v907_v28 = vadd.f32 0.4994258, %v906_v26  ;;  %v896_v48 = vadd.f32 0.18741608, %v895_v42  ;;  %v882_v20 = vor.u32 1.1754944e-38, %v881_v46 }
 0x122   : > { %vm880_vm3 = vcmp.eq.f32.partialorder %v879_v36, 8.507059e+37 }
 0x123   : > { %v908_v32 = vmul.f32 %v907_v28, %v888_v62  ;;  %v897_v18 = vmul.f32 %v896_v48, %v888_v62  ;;  %v1165_v62 = vld [vmem:[%s1669_s7] ss:$0 sm:$0xff] }
 0x125   : > { %v1176_v39 = vpop.eup %1175  ;;  %v909_v19 = vadd.f32 1.0, %v908_v32  ;;  %v898_v13 = vadd.f32 1.1283791, %v897_v18 }
 0x126   : > { %v871_v41 = vmul.f32 %v1176_v39, %v869_v38  ;;  %vm876_vm0 = vweird.f32 %v1176_v39 }
 0x127   : > { %1177 = vrcp.f32 %v909_v19  ;;  %vm877_vm2 = vmor %vm875_vm1, %vm876_vm0  ;;  %v921_v14 = vand.u32 2147483648, %v909_v19  ;;  %v919_v56 = vand.u32 2147483647, %v909_v19  ;;  %vm915_vm5 = vweird.f32 %v909_v19 }
 0x128   : > { %v872_v44 = vsub.f32 1.0, %v871_v41  ;;  %v899_v10 = vmul.f32 %v898_v13, %v1612_v59  ;;  %v1166_v59 = vld [vmem:[%s1670_s8] ss:$0 sm:$0xff] }
 0x129   : > { %v922_v57 = vor.u32 1.1754944e-38, %v921_v14  ;;  %vm920_vm7 = vcmp.eq.f32.partialorder %v919_v56, 8.507059e+37 }
 0x12a   : > { %v873_v47 = vmul.f32 %v1176_v39, %v872_v44 }
 0x12c   : > { %v874_v49 = vadd.f32 %v1176_v39, %v873_v47 }
 0x12d   : > { %v1178_v50 = vpop.eup %1177 }
 0x12e   : > { %v878_v31 = vsel %vm877_vm2, %v1176_v39, %v874_v49  ;;  %v911_v12 = vmul.f32 %v1178_v50, %v909_v19  ;;  %vm916_vm4 = vweird.f32 %v1178_v50 }
 0x12f   : > { %v883_v8 = vsel %vm880_vm3, %v882_v20, %v878_v31  ;;  %vm917_vm6 = vmor %vm915_vm5, %vm916_vm4 }
 0x130   : > { %v884_v52 = vmul.f32 %v883_v8, %v859_v51  ;;  %v912_v9 = vsub.f32 1.0, %v911_v12 }
 0x132   : > { %v1101_v54 = vclamps-f32 %v884_v52, 1.0  ;;  %v913_v55 = vmul.f32 %v1178_v50, %v912_v9 }
 0x134   : > { %v914_v11 = vadd.f32 %v1178_v50, %v913_v55  ;;  %v927_v58 = vadd.f32 1.0, %v1101_v54 }
 0x136   : > { %v918_v60 = vsel %vm917_vm6, %v1178_v50, %v914_v11  ;;  %v929_v22 = vmul.f32 %v927_v58, %v843_v61 }
 0x137   : > { %v923_v43 = vsel %vm920_vm7, %v922_v57, %v918_v60 }
 0x138   : > { %v924_v21 = vmul.f32 %v923_v43, %v899_v10  ;;  %v935_v24 = vmul.f32 %v1165_v62, %v929_v22 }
 0x13a   : > { %v1102_v63 = vclamps-f32 %v924_v21, 1.0  ;;  %v941_v53 = vadd.f32 %v1166_v59, %v935_v24 }
 0x13c   : > { %v928_v1 = vadd.f32 1.0, %v1102_v63 }
 0x13e   : > { %v930_v2 = vmul.f32 %v928_v1, %v844_v0 }
 0x140   : > { %v936_v3 = vmul.f32 %v1165_v62, %v930_v2 }
 0x142   : > { %v942_v4 = vadd.f32 %v1166_v59, %v936_v3 }
 0x144   : > { %v1118_v35 = vpack.c.bf16 %v942_v4, %v941_v53  ;;  %v947_v34 = vadd.f32 %v942_v4, %v941_v53 }
 0x146   : > { %1119 = vst [vmem:[%s369_s26] sm:$0xff] %v1118_v35   ;;  %v948_v16 = vrot.slane %v947_v34, 4 }
 0x148   : > { %v949_v5 = vadd.f32 %v948_v16, %v947_v34 }
 0x14a   : > { %v950_v6 = vrot.slane %v949_v5, 2 }
 0x14c   : > { %v951_v37 = vadd.f32 %v950_v6, %v949_v5 }
 0x14e   : > { %v952_v7 = vrot.slane %v951_v37, 1 }
 0x150   : > { %v953_v29 = vadd.f32 %v952_v7, %v951_v37 }
 0x152   : > { %v954_v15 = vmul.f32 0.0625, %v953_v29 }
 0x154   : > { %955 = vst [vmem:[%s359_s18] sm:$0x1] %v954_v15 }
 0x155   : > { %1206 = shalt.err (!%p1203_p3)
}
 0x156   : > { %1120 = dma.vmem_to_hbm [thread:$0]  (%p1337_p5), %s976_s29, 16, %s978_s20, %s962_s12  }
 0x157 PF: > { %p1126_p4 = scmp.ge.s32.totalorder %s1241_s16, 2  ;;  %s997_s27 = sand.u32 1, %s1229_s13  }
 0x158   : > { %s998_s11 = scalar_lea.sflag [#allocation5], %s997_s27 }
 0x159   : > { %p1123_p7 = pnand %p1126_p4, %p1341_p6 }
 0x15b   : > { %p1124_p8 = pneg %p1123_p7 }
 0x15d   : > { %1224 = dma.done.wait (%p1124_p8), %s998_s11, 16  }
 0x15e   : > { %1226 = vsyncadd (%p1124_p8), %s998_s11, 4294967280  ;;  %p21_p9 = scmp.ge.s32.totalorder %s1324_s19, 4   ;;  %s1687_s13 = smov %s1233_s14 }
 0x15f   : > { %s1688_s14 = smov %s1237_s15  ;;  %s1689_s15 = smov %s1335_s22 }
 0x160   : > { %s1690_s16 = smov %s1324_s19  ;;  %23 = sbr.rel (!%p21_p9) target bundleno = 5 (0x5), region = 104 }
 0x165   :  { %1003 = vsyncpa [#allocation5], 1 }
 0x166   :  { %1005 = vsyncpa [#allocation5 + $0x1], 1 }

// kernel: convmixer_forward.5
= control target key start
LH: loop header
LB: loop body
LE: loop exit
PB: predicated region body
PF: predicated region fallthrough
CT: control target
= control target key end

     0   :  { %s1667_s0 = inlined_call_operand.vmem [shape: bf16[2,4,4,128], index: 0, kind: input, shape index: {}]   ;;  %s1668_s1 = inlined_call_operand.vmem [shape: f32[9,128], index: 1, kind: input, shape index: {}]   ;;  %s1669_s2 = inlined_call_operand.vmem [shape: f32[1,128], index: 2, kind: input, shape index: {}]   ;;  %s1670_s3 = inlined_call_operand.vmem [shape: f32[1,128], index: 3, kind: input, shape index: {}]   ;;  %s1671_s4 = inlined_call_operand.vmem [shape: f32[1,128], index: 4, kind: input, shape index: {}]   ;;  %s1672_s5 = inlined_call_operand.vmem [shape: bf16[128,128], index: 5, kind: input, shape index: {}]   ;;  %s1673_s6 = inlined_call_operand.vmem [shape: f32[1,128], index: 6, kind: input, shape index: {}]   ;;  %s1674_s7 = inlined_call_operand.vmem [shape: f32[1,128], index: 7, kind: input, shape index: {}]   ;;  %s1675_s8 = inlined_call_operand.vmem [shape: f32[1,128], index: 8, kind: input, shape index: {}]   ;;  %s1676_s9 = inlined_call_operand.hbm [shape: bf16[2,16,128], index: 9, kind: output, shape index: {0}]   ;;  %s1677_s10 = inlined_call_operand.vmem [shape: f32[2,1,128], index: 10, kind: output, shape index: {1}]  }
   0x1   :  { %1678 = sst [smem:[#allocation7_spill]] %s1667_s0 }
   0x2   :  { %16 = vsyncpa [#allocation5], 0 }
   0x3   :  { %18 = vsyncpa [#allocation5 + $0x1], 0  ;;  %s1304_s13 = smov 0   ;;  %s1306_s14 = smov 0  }
   0x4   :  { %s1308_s15 = smov 0   ;;  %s1310_s16 = smov 0  }
   0x5 LB: > { %s1325_s17 = sadd.s32 4294967295, %s1244_s16   ;;  %s1056_s18 = sadd.s32 4294967294, %s1244_s16   ;;  %s1244_s16 = sphi %s1310_s16, %s1695_s16   ;;  %s1240_s15 = sphi %s1308_s15, %s1694_s15   ;;  %s1236_s14 = sphi %s1306_s14, %s1693_s14   ;;  %s1232_s13 = sphi %s1304_s13, %s1692_s13  }
   0x6   : > { %s1329_s19 = sadd.s32 1, %s1244_s16   ;;  %s225_s20 = sadd.s32 1, %s1240_s15 }
   0x7   : > { %s222_s21 = ssub.s32 %s1244_s16, %s1329_s19  ;;  %p235_p0 = scmp.ne.s32.totalorder %s1240_s15, %s1236_s14 }
   0x8   : > { %p223_p1 = scmp.eq.s32.totalorder %s222_s21, 0  ;;  %p236_p2 = scmp.eq.s32.totalorder %s1325_s17, 1 }
   0x9   : > { %p241_p3 = scmp.ne.s32.totalorder %s1236_s14, %s1232_s13  ;;  %p242_p4 = scmp.eq.s32.totalorder %s1056_s18, 1 }
   0xa   : > { %s1340_s22 = scalar_select %p223_p1, %s1240_s15, %s225_s20  }
   0xb   : > { %p1342_p5 = por %p236_p2, %p235_p0  ;;  %p1346_p6 = por %p242_p4, %p241_p3 }
   0xc   : > { %p1059_p7 = scmp.ge.s32.totalorder %s1244_s16, 1  ;;  %p318_p8 = scmp.lt.s32.totalorder %s1244_s16, 3 }
   0xe   : > { %p319_p9 = pnand %p1059_p7, %p318_p8 }
   0xf   : > { %p359_p10 = scmp.lt.s32.totalorder (!%p319_p9), %s1325_s17, 1  ;;  %s1681_s0 = sld [smem:[#allocation7_spill]] (!%p319_p9) }
  0x10   : > { %322 = sbr.rel (%p319_p9) target bundleno = 341 (0x155), region = 56  ;;  %s351_s27 = sand.u32 (!%p319_p9), 1, %s1236_s14  }
  0x11   : > { %s1115_s11 = sshll.u32 (!%p319_p9), %s1325_s17, 3  ;;  %s954_s30 = scalar_lea.sflag (!%p319_p9), [#allocation5], %s351_s27 }
  0x12   : > { %s968_s21 = scalar_lea.hbm (!%p319_p9), %s1676_s9, %s1115_s11 }
  0x15   : > { %v1114_v0 = vld [vmem:[%s1672_s5 + $0x38] sm:$0xff]  ;;  %v1246_v1 = vmov 0.0   ;;  %v1113_v2 = vld [vmem:[%s1672_s5 + $0x30] sm:$0xff]  ;;  %s1360_s29 = scalar_select %p359_p10, %s1325_s17, 1  ;;  %v392_v3 = vld [vmem:[%s1668_s1] sm:$0xff] }
  0x16   : > { %375 = vst [vmem:[#allocation2] sm:$0x3f] %v1246_v1  ;;  %826 = vmatpush.bf16.msra.mxu0 %v1114_v0  ;;  %v1112_v4 = vld [vmem:[%s1672_s5 + $0x28] sm:$0xff]  ;;  %v394_v5 = vperm.slane %v392_v3, 0  ;;  %v403_v6 = vperm.slane %v392_v3, 1  ;;  %v424_v7 = vperm.slane %v392_v3, 2 }
  0x17   : > { %376 = vst [vmem:[#allocation2 + $0x8] sm:$0x3f] %v1246_v1  ;;  %s1106_s12 = sshll.u32 %s1360_s29, 3  ;;  %v1111_v15 = vld [vmem:[%s1672_s5 + $0x20] sm:$0xff]  ;;  %v1393_v22 = vperm.slane %v392_v3, 6  ;;  %v1397_v24 = vperm.slane %v392_v3, 7 }
  0x18   : > { %377 = vst [vmem:[#allocation2 + $0x10] sm:$0x3f] %v1246_v1  ;;  %s363_s26 = scalar_lea.vmem %s1681_s0, %s1106_s12  ;;  %v1402_v25 = vld [vmem:[%s1668_s1 + $0x8] ss:$0 sm:$0xff]  ;;  %v445_v27 = vperm.slane %v392_v3, 3  ;;  %v1110_v28 = vld [vmem:[%s1672_s5 + $0x18] sm:$0xff] }
  0x19   : > { %378 = vst [vmem:[#allocation2 + $0x18] sm:$0x3f] %v1246_v1  ;;  %v1372_v8 = vld [vmem:[%s363_s26] sm:$0x3]  ;;  %v1374_v9 = vld [vmem:[%s363_s26 + $0x2] sm:$0x3] }
  0x1a   : > { %379 = vst [vmem:[#allocation2 + $0x20] sm:$0x3f] %v1246_v1  ;;  %827 = vmatpush.bf16.msra.mxu0 %v1113_v2  ;;  %v1376_v10 = vld [vmem:[%s363_s26 + $0x4] sm:$0x3]  ;;  %v1378_v11 = vld [vmem:[%s363_s26 + $0x6] sm:$0x3]  ;;  %v371_v12 = vunpack.c.l.bf16 %v1372_v8  ;;  %v372_v13 = vunpack.c.l.bf16 %v1374_v9 }
  0x1b   : > { %v373_v14 = vunpack.c.l.bf16 %v1376_v10  ;;  %380 = vst [vmem:[#allocation2 + $0x28] sm:$0x3f] %v1246_v1  ;;  %v374_v16 = vunpack.c.l.bf16 %v1378_v11  ;;  %v454_v30 = vperm.slane %v392_v3, 4  ;;  %v475_v31 = vperm.slane %v392_v3, 5  ;;  %v1109_v42 = vld [vmem:[%s1672_s5 + $0x10] sm:$0xff]  ;;  %v1108_v61 = vld [vmem:[%s1672_s5 + $0x8] sm:$0xff] }
  0x1c   : > { %382 = vst [vmem:[#allocation2 + $0x9] sm:$0xf] %v371_v12  ;;  %v1167_v9 = vld [vmem:[%s1673_s6] ss:$0 sm:$0xff]  ;;  %s1060_s12 = sshll.u32 %s351_s27, 3  ;;  %s971_s17 = sshll.u32 %s968_s21, 4  ;;  %s972_s17 = int_to_ptr.hbm [resolvable:$true] %s971_s17 }
  0x1d   : > { %v386_v17 = vld [vmem:[#allocation2] sm:$0x3f]  ;;  %383 = vst [vmem:[#allocation2 + $0x11] sm:$0xf] %v372_v13  ;;  %s353_s0 = scalar_lea.vmem [#allocation4], %s1060_s12  ;;  %s1196_s11 = sshra.s32 %s972_s17, 4  ;;  %s1197_s11 = int_to_ptr.hbm [resolvable:$true] %s1196_s11 }
  0x1e   : > { %v395_v18 = vmul.f32 %v394_v5, %v386_v17  ;;  %v404_v19 = vmul.f32 %v403_v6, %v386_v17  ;;  %v425_v20 = vmul.f32 %v424_v7, %v386_v17  ;;  %828 = vmatpush.bf16.msra.mxu0 %v1112_v4  ;;  %384 = vst [vmem:[#allocation2 + $0x19] sm:$0xf] %v373_v14  ;;  %s1633_s28 = sshll.u32 %s353_s0, 4  ;;  %s1198_s18 = scalar_lea.hbm %s1197_s11, 8  ;;  %s970_s28 = int_to_ptr.vmem [resolvable:$true] %s1633_s28 }
  0x1f   : > { %385 = vst [vmem:[#allocation2 + $0x21] sm:$0xf] %v374_v16  ;;  %p1199_p11 = scmp.ne.s32.totalorder %s1197_s11, %s1198_s18  ;;  %s1202_s21 = scalar_lea.hbm %s1676_s9, 16 }
  0x20   : > { %v412_v21 = vrot.slane %v404_v19, 1  ;;  %v433_v23 = vrot.slane %v425_v20, 2  ;;  %p1203_p0 = scmp.lt.s32.totalorder %s1197_s11, %s1676_s9  ;;  %p1204_p1 = scmp.lt.s32.totalorder %s1202_s21, %s1198_s18 }
  0x21   : > { %p1200_p12 = pnand %p1199_p11, %p1342_p5 }
  0x22   : > { %v420_v26 = vadd.f32 %v412_v21, %v395_v18  ;;  %829 = vmatpush.bf16.msra.mxu0 %v1111_v15  ;;  %v391_v29 = vld [vmem:[#allocation2 + $0x28] sm:$0x3f]  ;;  %p1205_p2 = por %p1204_p1, %p1203_p0 }
  0x23   : > { %v387_v32 = vld [vmem:[#allocation2 + $0x8] sm:$0x3f]  ;;  %v1408_v34 = vmul.f32 %v1393_v22, %v391_v29  ;;  %v1411_v35 = vmul.f32 %v1397_v24, %v391_v29  ;;  %v1414_v36 = vmul.f32 %v1402_v25, %v391_v29  ;;  %p1201_p13 = pneg %p1200_p12 }
  0x24   : > { %v441_v33 = vadd.f32 %v433_v23, %v420_v26  ;;  %v1416_v37 = vld [vmem:[#allocation2 + $0x10] sm:$0x3f]  ;;  %v396_v38 = vmul.f32 %v394_v5, %v387_v32  ;;  %v405_v39 = vmul.f32 %v403_v6, %v387_v32  ;;  %v426_v40 = vmul.f32 %v424_v7, %v387_v32  ;;  %v1107_v23 = vld [vmem:[%s1672_s5] sm:$0xff] }
  0x25   : > { %v446_v41 = vmul.f32 %v445_v27, %v387_v32  ;;  %v1421_v43 = vld [vmem:[#allocation2 + $0x18] sm:$0x3f]  ;;  %v397_v44 = vmul.f32 %v394_v5, %v1416_v37  ;;  %v406_v45 = vmul.f32 %v403_v6, %v1416_v37  ;;  %v427_v46 = vmul.f32 %v424_v7, %v1416_v37  ;;  %p1206_p3 = pnand %p1205_p2, %p1201_p13 }
  0x26   : > { %830 = vmatpush.bf16.msra.mxu0 %v1110_v28  ;;  %v447_v47 = vmul.f32 %v445_v27, %v1416_v37  ;;  %v1427_v48 = vld [vmem:[#allocation2 + $0x20] sm:$0x3f]  ;;  %v398_v49 = vmul.f32 %v394_v5, %v1421_v43  ;;  %v407_v50 = vmul.f32 %v403_v6, %v1421_v43  ;;  %v413_v51 = vrot.slane %v405_v39, 1 }
  0x27   : > { %v428_v52 = vmul.f32 %v424_v7, %v1421_v43  ;;  %v414_v53 = vrot.slane %v406_v45, 1  ;;  %v434_v54 = vrot.slane %v426_v40, 2  ;;  %v435_v55 = vrot.slane %v427_v46, 2 }
  0x28   : > { %v448_v56 = vmul.f32 %v445_v27, %v1421_v43  ;;  %v415_v57 = vrot.slane %v407_v50, 1  ;;  %v421_v58 = vadd.f32 %v413_v51, %v396_v38  ;;  %v449_v60 = vmul.f32 %v445_v27, %v1427_v48 }
  0x29   : > { %v436_v59 = vrot.slane %v428_v52, 2  ;;  %v422_v62 = vadd.f32 %v414_v53, %v397_v44  ;;  %v450_v63 = vadd.f32 %v446_v41, %v441_v33  ;;  %v455_v0 = vmul.f32 %v454_v30, %v387_v32 }
  0x2a   : > { %831 = vmatpush.bf16.msra.mxu0 %v1109_v42  ;;  %v456_v1 = vmul.f32 %v454_v30, %v1416_v37  ;;  %v423_v2 = vadd.f32 %v415_v57, %v398_v49  ;;  %v442_v3 = vadd.f32 %v434_v54, %v421_v58  ;;  %v457_v4 = vmul.f32 %v454_v30, %v1421_v43 }
  0x2b   : > { %v458_v5 = vmul.f32 %v454_v30, %v1427_v48  ;;  %v443_v6 = vadd.f32 %v435_v55, %v422_v62  ;;  %v463_v7 = vrot.slane %v455_v0, 1  ;;  %v476_v17 = vmul.f32 %v475_v31, %v387_v32 }
  0x2c   : > { %v464_v15 = vrot.slane %v456_v1, 1  ;;  %v444_v18 = vadd.f32 %v436_v59, %v423_v2  ;;  %v451_v19 = vadd.f32 %v447_v47, %v442_v3  ;;  %v465_v20 = vrot.slane %v457_v4, 1 }
  0x2d   : > { %v466_v21 = vrot.slane %v458_v5, 1  ;;  %v452_v26 = vadd.f32 %v448_v56, %v443_v6  ;;  %v471_v27 = vadd.f32 %v463_v7, %v450_v63  ;;  %v477_v28 = vmul.f32 %v475_v31, %v1416_v37 }
  0x2e   : > { %832 = vmatpush.bf16.msra.mxu0 %v1108_v61  ;;  %v478_v29 = vmul.f32 %v475_v31, %v1421_v43  ;;  %v453_v30 = vadd.f32 %v449_v60, %v444_v18  ;;  %v472_v33 = vadd.f32 %v464_v15, %v451_v19  ;;  %v479_v38 = vmul.f32 %v475_v31, %v1427_v48 }
  0x2f   : > { %v484_v32 = vrot.slane %v476_v17, 2  ;;  %v473_v39 = vadd.f32 %v465_v20, %v452_v26  ;;  %v485_v40 = vrot.slane %v477_v28, 2  ;;  %v497_v42 = vmul.f32 %v1393_v22, %v1416_v37 }
  0x30   : > { %v486_v41 = vrot.slane %v478_v29, 2  ;;  %v474_v44 = vadd.f32 %v466_v21, %v453_v30  ;;  %v487_v45 = vrot.slane %v479_v38, 2  ;;  %v498_v47 = vmul.f32 %v1393_v22, %v1421_v43 }
  0x31   : > { %v492_v46 = vadd.f32 %v484_v32, %v471_v27  ;;  %v493_v49 = vadd.f32 %v485_v40, %v472_v33  ;;  %v499_v51 = vmul.f32 %v1393_v22, %v1427_v48  ;;  %v506_v31 = vmul.f32 %v1397_v24, %v1416_v37 }
  0x32   : > { %833 = vmatpush.bf16.msra.mxu0 %v1107_v23  ;;  %v494_v50 = vadd.f32 %v486_v41, %v473_v39  ;;  %v495_v52 = vadd.f32 %v487_v45, %v474_v44  ;;  %v507_v54 = vmul.f32 %v1397_v24, %v1421_v43  ;;  %v508_v55 = vmul.f32 %v1397_v24, %v1427_v48 }
  0x33   : > { %v501_v53 = vadd.f32 %v497_v42, %v492_v46  ;;  %v502_v56 = vadd.f32 %v498_v47, %v493_v49  ;;  %v514_v58 = vrot.slane %v506_v31, 1  ;;  %v517_v59 = vrot.slane %v1411_v35, 1 }
  0x34   : > { %v503_v57 = vadd.f32 %v499_v51, %v494_v50  ;;  %v504_v60 = vadd.f32 %v1408_v34, %v495_v52  ;;  %v515_v61 = vrot.slane %v507_v54, 1  ;;  %v516_v22 = vrot.slane %v508_v55, 1  ;;  %v1164_v34 = vld [vmem:[%s1669_s2] ss:$0 sm:$0xff] }
  0x35   : > { %v527_v62 = vmul.f32 %v1402_v25, %v1416_v37  ;;  %v522_v63 = vadd.f32 %v514_v58, %v501_v53  ;;  %v528_v0 = vmul.f32 %v1402_v25, %v1421_v43  ;;  %v529_v1 = vmul.f32 %v1402_v25, %v1427_v48 }
  0x36   : > { %v538_v24 = vrot.slane %v1414_v36, 2  ;;  %v523_v2 = vadd.f32 %v515_v61, %v502_v56  ;;  %v524_v3 = vadd.f32 %v516_v22, %v503_v57  ;;  %v525_v4 = vadd.f32 %v517_v59, %v504_v60 }
  0x37   : > { %v535_v35 = vrot.slane %v527_v62, 2  ;;  %v536_v5 = vrot.slane %v528_v0, 2  ;;  %v537_v6 = vrot.slane %v529_v1, 2 }
  0x38   : > { %v546_v7 = vadd.f32 %v538_v24, %v525_v4 }
  0x39   : > { %v543_v37 = vadd.f32 %v535_v35, %v522_v63  ;;  %v544_v15 = vadd.f32 %v536_v5, %v523_v2  ;;  %v545_v17 = vadd.f32 %v537_v6, %v524_v3 }
  0x3a   : > { %v1472_v18 = vadd.f32 %v1164_v34, %v546_v7 }
  0x3b   : > { %v1470_v43 = vadd.f32 %v1164_v34, %v543_v37  ;;  %v1474_v25 = vadd.f32 %v1164_v34, %v544_v15  ;;  %v1476_v36 = vadd.f32 %v1164_v34, %v545_v17 }
  0x3c   : > { %v1482_v19 = vmul.f32 0.70710677, %v1472_v18 }
  0x3d   : > { %v1479_v48 = vmul.f32 0.70710677, %v1470_v43  ;;  %v1485_v20 = vmul.f32 0.70710677, %v1474_v25  ;;  %v1488_v21 = vmul.f32 0.70710677, %v1476_v36 }
  0x3e   : > { %v683_v26 = vmul.f32 %v1482_v19, %v1482_v19 }
  0x3f   : > { %v563_v23 = vmul.f32 %v1479_v48, %v1479_v48  ;;  %v603_v27 = vmul.f32 %v1485_v20, %v1485_v20  ;;  %v643_v28 = vmul.f32 %v1488_v21, %v1488_v21 }
  0x40   : > { %v1500_v30 = vmin.f32 %v683_v26, 16.0 }
  0x41   : > { %v1498_v29 = vmin.f32 %v563_v23, 16.0  ;;  %v1502_v33 = vmin.f32 %v603_v27, 16.0  ;;  %v1504_v38 = vmin.f32 %v643_v28, 16.0 }
  0x42   : > { %v685_v40 = vmul.f32 2.1237322e-06, %v1500_v30  ;;  %v696_v58 = vmul.f32 3.8918573e-05, %v1500_v30 }
  0x43   : > { %v565_v32 = vmul.f32 2.1237322e-06, %v1498_v29  ;;  %v576_v39 = vmul.f32 3.8918573e-05, %v1498_v29  ;;  %v605_v41 = vmul.f32 2.1237322e-06, %v1502_v33 }
  0x44   : > { %v616_v42 = vmul.f32 3.8918573e-05, %v1502_v33  ;;  %v645_v44 = vmul.f32 2.1237322e-06, %v1504_v38  ;;  %v656_v47 = vmul.f32 3.8918573e-05, %v1504_v38 }
  0x45   : > { %v566_v45 = vadd.f32 0.00028619796, %v565_v32  ;;  %v577_v46 = vadd.f32 0.001143296, %v576_v39  ;;  %v606_v49 = vadd.f32 0.00028619796, %v605_v41 }
  0x46   : > { %v617_v50 = vadd.f32 0.001143296, %v616_v42  ;;  %v646_v51 = vadd.f32 0.00028619796, %v645_v44  ;;  %v657_v53 = vadd.f32 0.001143296, %v656_v47 }
  0x47   : > { %v567_v31 = vmul.f32 %v566_v45, %v1498_v29  ;;  %v578_v52 = vmul.f32 %v577_v46, %v1498_v29  ;;  %v686_v54 = vadd.f32 0.00028619796, %v685_v40  ;;  %v607_v55 = vmul.f32 %v606_v49, %v1502_v33 }
  0x48   : > { %v618_v56 = vmul.f32 %v617_v50, %v1502_v33  ;;  %v647_v57 = vmul.f32 %v646_v51, %v1504_v38  ;;  %v658_v61 = vmul.f32 %v657_v53, %v1504_v38  ;;  %v697_v5 = vadd.f32 0.001143296, %v696_v58 }
  0x49   : > { %v568_v59 = vadd.f32 0.0036580483, %v567_v31  ;;  %v579_v60 = vadd.f32 0.014752088, %v578_v52  ;;  %v687_v22 = vmul.f32 %v686_v54, %v1500_v30  ;;  %v608_v62 = vadd.f32 0.0036580483, %v607_v55 }
  0x4a   : > { %v619_v63 = vadd.f32 0.014752088, %v618_v56  ;;  %v648_v0 = vadd.f32 0.0036580483, %v647_v57  ;;  %v659_v2 = vadd.f32 0.014752088, %v658_v61  ;;  %v698_v27 = vmul.f32 %v697_v5, %v1500_v30 }
  0x4b   : > { %v569_v1 = vmul.f32 %v568_v59, %v1498_v29  ;;  %v580_v24 = vmul.f32 %v579_v60, %v1498_v29  ;;  %v688_v3 = vadd.f32 0.0036580483, %v687_v22  ;;  %v609_v4 = vmul.f32 %v608_v62, %v1502_v33 }
  0x4c   : > { %v620_v35 = vmul.f32 %v619_v63, %v1502_v33  ;;  %v649_v34 = vmul.f32 %v648_v0, %v1504_v38  ;;  %v660_v7 = vmul.f32 %v659_v2, %v1504_v38  ;;  %v699_v41 = vadd.f32 0.014752088, %v698_v27 }
  0x4d   : > { %v570_v6 = vadd.f32 0.05243302, %v569_v1  ;;  %v581_v37 = vadd.f32 0.112945676, %v580_v24  ;;  %v689_v15 = vmul.f32 %v688_v3, %v1500_v30  ;;  %v610_v17 = vadd.f32 0.05243302, %v609_v4 }
  0x4e   : > { %v621_v23 = vadd.f32 0.112945676, %v620_v35  ;;  %v650_v26 = vadd.f32 0.05243302, %v649_v34  ;;  %v661_v32 = vadd.f32 0.112945676, %v660_v7  ;;  %v700_v50 = vmul.f32 %v699_v41, %v1500_v30 }
  0x4f   : > { %v582_v28 = vmul.f32 %v581_v37, %v1498_v29  ;;  %v571_v39 = vmul.f32 %v570_v6, %v1498_v29  ;;  %v611_v44 = vmul.f32 %v610_v17, %v1502_v33  ;;  %v690_v46 = vadd.f32 0.05243302, %v689_v15 }
  0x50   : > { %v622_v40 = vmul.f32 %v621_v23, %v1502_v33  ;;  %v662_v45 = vmul.f32 %v661_v32, %v1504_v38  ;;  %v651_v49 = vmul.f32 %v650_v26, %v1504_v38  ;;  %v701_v53 = vadd.f32 0.112945676, %v700_v50 }
  0x51   : > { %v583_v42 = vadd.f32 0.4994258, %v582_v28  ;;  %v572_v54 = vadd.f32 0.18741608, %v571_v39  ;;  %v612_v56 = vadd.f32 0.18741608, %v611_v44  ;;  %v691_v57 = vmul.f32 %v690_v46, %v1500_v30 }
  0x52   : > { %v623_v47 = vadd.f32 0.4994258, %v622_v40  ;;  %v663_v31 = vadd.f32 0.4994258, %v662_v45  ;;  %v652_v59 = vadd.f32 0.18741608, %v651_v49  ;;  %v702_v61 = vmul.f32 %v701_v53, %v1500_v30 }
  0x53   : > { %v584_v51 = vmul.f32 %v583_v42, %v1498_v29  ;;  %v573_v22 = vmul.f32 %v572_v54, %v1498_v29  ;;  %v692_v62 = vadd.f32 0.18741608, %v691_v57  ;;  %v613_v63 = vmul.f32 %v612_v56, %v1502_v33 }
  0x54   : > { %v624_v52 = vmul.f32 %v623_v47, %v1502_v33  ;;  %v664_v60 = vmul.f32 %v663_v31, %v1504_v38  ;;  %v653_v0 = vmul.f32 %v652_v59, %v1504_v38  ;;  %v703_v24 = vadd.f32 0.4994258, %v702_v61 }
  0x55   : > { %v585_v55 = vadd.f32 1.0, %v584_v51  ;;  %v574_v3 = vadd.f32 1.1283791, %v573_v22  ;;  %v693_v4 = vmul.f32 %v692_v62, %v1500_v30  ;;  %v614_v37 = vadd.f32 1.1283791, %v613_v63 }
  0x56   : > { %v625_v58 = vadd.f32 1.0, %v624_v52  ;;  %v665_v1 = vadd.f32 1.0, %v664_v60  ;;  %v704_v35 = vmul.f32 %v703_v24, %v1500_v30  ;;  %v654_v7 = vadd.f32 1.1283791, %v653_v0 }
  0x57   : > { %1170 = vrcp.f32 %v585_v55  ;;  %v595_v6 = vand.u32 2147483647, %v585_v55  ;;  %vm591_vm0 = vweird.f32 %v585_v55  ;;  %v597_v29 = vand.u32 2147483648, %v585_v55 }
  0x58   : > { %1172 = vrcp.f32 %v625_v58  ;;  %v1546_v33 = vadd.f32 1.0, %v704_v35  ;;  %v635_v17 = vand.u32 2147483647, %v625_v58  ;;  %v637_v23 = vand.u32 2147483648, %v625_v58 }
  0x59   : > { %1174 = vrcp.f32 %v665_v1  ;;  %vm631_vm2 = vweird.f32 %v625_v58  ;;  %v575_v27 = vmul.f32 %v574_v3, %v1479_v48  ;;  %vm1550_vm4 = vcmp.eq.f32.partialorder %v595_v6, 8.507059e+37  ;;  %v1165_v6 = vld [vmem:[%s1670_s3] ss:$0 sm:$0xff] }
  0x5a   : > { %1176 = vrcp.f32 %v1546_v33  ;;  %v615_v39 = vmul.f32 %v614_v37, %v1485_v20  ;;  %v598_v41 = vor.u32 1.1754944e-38, %v597_v29  ;;  %v675_v45 = vand.u32 2147483647, %v665_v1 }
  0x5b   : > { %vm1564_vm7 = vcmp.eq.f32.partialorder %v635_v17, 8.507059e+37  ;;  %v638_v49 = vor.u32 1.1754944e-38, %v637_v23  ;;  %v677_v20 = vand.u32 2147483648, %v665_v1  ;;  %vm671_vm8 = vweird.f32 %v665_v1 }
  0x5c   : > { %v555_v31 = vmul.f32 0.5, %v1470_v43  ;;  %v655_v53 = vmul.f32 %v654_v7, %v1488_v21  ;;  %v694_v54 = vadd.f32 1.1283791, %v693_v4  ;;  %vm1576_vm10 = vcmp.eq.f32.partialorder %v675_v45, 8.507059e+37 }
  0x5d   : > { %v1171_v2 = vpop.eup %1170  ;;  %v678_v61 = vor.u32 1.1754944e-38, %v677_v20  ;;  %vm711_vm12 = vweird.f32 %v1546_v33  ;;  %v717_v63 = vand.u32 2147483648, %v1546_v33  ;;  %v715_v24 = vand.u32 2147483647, %v1546_v33 }
  0x5e   : > { %v1173_v34 = vpop.eup %1172  ;;  %v587_v5 = vmul.f32 %v1171_v2, %v585_v55  ;;  %vm592_vm1 = vweird.f32 %v1171_v2  ;;  %v557_v17 = vmul.f32 0.5, %v1476_v36 }
  0x5f   : > { %v627_v15 = vmul.f32 %v1173_v34, %v625_v58  ;;  %vm632_vm3 = vweird.f32 %v1173_v34  ;;  %v1175_v30 = vpop.eup %1174  ;;  %vm1556_vm5 = vmor %vm591_vm0, %vm592_vm1  ;;  %v718_v7 = vor.u32 1.1754944e-38, %v717_v63  ;;  %vm716_vm15 = vcmp.eq.f32.partialorder %v715_v24, 8.507059e+37 }
  0x60   : > { %v588_v38 = vsub.f32 1.0, %v587_v5  ;;  %v667_v44 = vmul.f32 %v1175_v30, %v665_v1  ;;  %vm1560_vm6 = vmor %vm631_vm2, %vm632_vm3  ;;  %vm672_vm9 = vweird.f32 %v1175_v30  ;;  %v1177_v55 = vpop.eup %1176 }
  0x61   : > { %v628_v26 = vsub.f32 1.0, %v627_v15  ;;  %vm673_vm11 = vmor %vm671_vm8, %vm672_vm9  ;;  %v707_v21 = vmul.f32 %v1177_v55, %v1546_v33  ;;  %vm712_vm13 = vweird.f32 %v1177_v55  ;;  %v695_v15 = vmul.f32 %v694_v54, %v1482_v19 }
  0x62   : > { %v589_v28 = vmul.f32 %v1171_v2, %v588_v38  ;;  %v668_v51 = vsub.f32 1.0, %v667_v44  ;;  %vm713_vm14 = vmor %vm711_vm12, %vm712_vm13  ;;  %v1166_v38 = vld [vmem:[%s1671_s4] ss:$0 sm:$0xff]  ;;  %v558_v44 = vmul.f32 0.5, %v1472_v18 }
  0x63   : > { %v629_v42 = vmul.f32 %v1173_v34, %v628_v26  ;;  %v708_v1 = vsub.f32 1.0, %v707_v21 }
  0x64   : > { %v590_v46 = vadd.f32 %v1171_v2, %v589_v28  ;;  %v669_v58 = vmul.f32 %v1175_v30, %v668_v51 }
  0x65   : > { %v630_v50 = vadd.f32 %v1173_v34, %v629_v42 }
  0x66   : > { %v594_v52 = vsel %vm1556_vm5, %v1171_v2, %v590_v46  ;;  %v670_v62 = vadd.f32 %v1175_v30, %v669_v58  ;;  %v556_v2 = vmul.f32 0.5, %v1474_v25 }
  0x67   : > { %v599_v56 = vsel %vm1550_vm4, %v598_v41, %v594_v52  ;;  %v634_v57 = vsel %vm1560_vm6, %v1173_v34, %v630_v50  ;;  %v709_v34 = vmul.f32 %v1177_v55, %v708_v1 }
  0x68   : > { %v600_v60 = vmul.f32 %v599_v56, %v575_v27  ;;  %v639_v43 = vsel %vm1564_vm7, %v638_v49, %v634_v57  ;;  %v674_v4 = vsel %vm673_vm11, %v1175_v30, %v670_v62 }
  0x69   : > { %v640_v22 = vmul.f32 %v639_v43, %v615_v39  ;;  %v679_v35 = vsel %vm1576_vm10, %v678_v61, %v674_v4  ;;  %v710_v33 = vadd.f32 %v1177_v55, %v709_v34 }
  0x6a   : > { %v1063_v0 = vclamps-f32 %v600_v60, 1.0  ;;  %v680_v37 = vmul.f32 %v679_v35, %v655_v53 }
  0x6b   : > { %v1064_v3 = vclamps-f32 %v640_v22, 1.0  ;;  %v714_v30 = vsel %vm713_vm14, %v1177_v55, %v710_v33 }
  0x6c   : > { %v723_v5 = vadd.f32 1.0, %v1063_v0  ;;  %v1065_v23 = vclamps-f32 %v680_v37, 1.0  ;;  %v719_v28 = vsel %vm716_vm15, %v718_v7, %v714_v30 }
  0x6d   : > { %v724_v29 = vadd.f32 1.0, %v1064_v3  ;;  %v720_v40 = vmul.f32 %v719_v28, %v695_v15 }
  0x6e   : > { %v727_v25 = vmul.f32 %v723_v5, %v555_v31  ;;  %v725_v32 = vadd.f32 1.0, %v1065_v23 }
  0x6f   : > { %v728_v26 = vmul.f32 %v724_v29, %v556_v2  ;;  %v1066_v45 = vclamps-f32 %v720_v40, 1.0 }
  0x70   : > { %v735_v27 = vmul.f32 %v1165_v6, %v727_v25  ;;  %v729_v42 = vmul.f32 %v725_v32, %v557_v17 }
  0x71   : > { %v736_v39 = vmul.f32 %v1165_v6, %v728_v26  ;;  %v726_v48 = vadd.f32 1.0, %v1066_v45 }
  0x72   : > { %v743_v41 = vadd.f32 %v1166_v38, %v735_v27  ;;  %v737_v47 = vmul.f32 %v1165_v6, %v729_v42 }
  0x73   : > { %v744_v19 = vadd.f32 %v1166_v38, %v736_v39  ;;  %v730_v20 = vmul.f32 %v726_v48, %v558_v44 }
  0x74   : > { %v747_v46 = vadd.f32 %v743_v41, %v371_v12  ;;  %v745_v49 = vadd.f32 %v1166_v38, %v737_v47 }
  0x75   : > { %v748_v36 = vadd.f32 %v744_v19, %v372_v13  ;;  %v738_v51 = vmul.f32 %v1165_v6, %v730_v20 }
  0x76   : > { %751 = vst [vmem:[#allocation3] sm:$0xf] %v747_v46  ;;  %v749_v50 = vadd.f32 %v745_v49, %v373_v14 }
  0x77   : > { %752 = vst [vmem:[#allocation3 + $0x4] sm:$0xf] %v748_v36  ;;  %v746_v31 = vadd.f32 %v1166_v38, %v738_v51 }
  0x78   : > { %753 = vst [vmem:[#allocation3 + $0x8] sm:$0xf] %v749_v50 }
  0x79   : > { %v750_v18 = vadd.f32 %v746_v31, %v374_v16 }
  0x7b   : > { %754 = vst [vmem:[#allocation3 + $0xc] sm:$0xf] %v750_v18 }
  0x7e   : > { %v755_v8 = vld [vmem:[#allocation3] sm:$0xff] }
  0x82   : > { %v756_v12 = vld [vmem:[#allocation3 + $0x8] sm:$0xff] }
  0x83   : > { %v757_v52 = vpack.c.bf16 %v756_v12, %v755_v8 }
  0x85   : > { %834 = vmatmul.bf16.vlgmr.msra.gmra.mxu0 %v757_v52 }
 0x102   : > { %v835_v13 = vpop.f32.mrf.mxu0 }
 0x103   : > { %v1609_v53 = vadd.f32 %v1167_v9, %v835_v13 }
 0x105   : > { %v842_v10 = vmul.f32 0.70710677, %v1609_v53 }
 0x107   : > { %v844_v14 = vmul.f32 %v842_v10, %v842_v10 }
 0x109   : > { %v845_v54 = vmin.f32 %v844_v14, 16.0 }
 0x10a   : > { %v837_v55 = vpop.f32.mrf.mxu0 }
 0x10b   : > { %v846_v56 = vmul.f32 2.1237322e-06, %v845_v54  ;;  %v857_v11 = vmul.f32 3.8918573e-05, %v845_v54  ;;  %v1612_v16 = vadd.f32 %v1167_v9, %v837_v55 }
 0x10d   : > { %v847_v57 = vadd.f32 0.00028619796, %v846_v56  ;;  %v858_v58 = vadd.f32 0.001143296, %v857_v11  ;;  %v1615_v59 = vmul.f32 0.70710677, %v1612_v16 }
 0x10f   : > { %v848_v60 = vmul.f32 %v847_v57, %v845_v54  ;;  %v859_v43 = vmul.f32 %v858_v58, %v845_v54  ;;  %v884_v61 = vmul.f32 %v1615_v59, %v1615_v59 }
 0x111   : > { %v849_v21 = vadd.f32 0.0036580483, %v848_v60  ;;  %v860_v22 = vadd.f32 0.014752088, %v859_v43  ;;  %v885_v62 = vmin.f32 %v884_v61, 16.0  ;;  %v840_v61 = vmul.f32 0.5, %v1609_v53 }
 0x112   : > { %v1169_v53 = vld [vmem:[%s1675_s8] ss:$0 sm:$0xff] }
 0x113   : > { %v861_v63 = vmul.f32 %v860_v22, %v845_v54  ;;  %v886_v0 = vmul.f32 2.1237322e-06, %v885_v62  ;;  %v897_v1 = vmul.f32 3.8918573e-05, %v885_v62  ;;  %v850_v24 = vmul.f32 %v849_v21, %v845_v54 }
 0x115   : > { %v862_v2 = vadd.f32 0.112945676, %v861_v63  ;;  %v887_v3 = vadd.f32 0.00028619796, %v886_v0  ;;  %v898_v4 = vadd.f32 0.001143296, %v897_v1 }
 0x116   : > { %v851_v6 = vadd.f32 0.05243302, %v850_v24  ;;  %v841_v0 = vmul.f32 0.5, %v1612_v16 }
 0x117   : > { %v863_v35 = vmul.f32 %v862_v2, %v845_v54  ;;  %v888_v34 = vmul.f32 %v887_v3, %v885_v62  ;;  %v899_v5 = vmul.f32 %v898_v4, %v885_v62 }
 0x118   : > { %v852_v25 = vmul.f32 %v851_v6, %v845_v54 }
 0x119   : > { %v864_v37 = vadd.f32 0.4994258, %v863_v35  ;;  %v889_v7 = vadd.f32 0.0036580483, %v888_v34  ;;  %v900_v29 = vadd.f32 0.014752088, %v899_v5 }
 0x11a   : > { %v853_v30 = vadd.f32 0.18741608, %v852_v25 }
 0x11b   : > { %v865_v15 = vmul.f32 %v864_v37, %v845_v54  ;;  %v901_v33 = vmul.f32 %v900_v29, %v885_v62  ;;  %v890_v17 = vmul.f32 %v889_v7, %v885_v62 }
 0x11c   : > { %v854_v40 = vmul.f32 %v853_v30, %v845_v54 }
 0x11d   : > { %v866_v38 = vadd.f32 1.0, %v865_v15  ;;  %v902_v23 = vadd.f32 0.112945676, %v901_v33  ;;  %v891_v27 = vadd.f32 0.05243302, %v890_v17 }
 0x11e   : > { %v855_v45 = vadd.f32 1.1283791, %v854_v40 }
 0x11f   : > { %1178 = vrcp.f32 %v866_v38  ;;  %v903_v26 = vmul.f32 %v902_v23, %v885_v62  ;;  %v892_v42 = vmul.f32 %v891_v27, %v885_v62  ;;  %v878_v46 = vand.u32 2147483648, %v866_v38 }
 0x120   : > { %v876_v36 = vand.u32 2147483647, %v866_v38  ;;  %vm872_vm1 = vweird.f32 %v866_v38  ;;  %v856_v51 = vmul.f32 %v855_v45, %v842_v10 }
 0x121   : > { %v904_v28 = vadd.f32 0.4994258, %v903_v26  ;;  %v893_v48 = vadd.f32 0.18741608, %v892_v42  ;;  %v879_v20 = vor.u32 1.1754944e-38, %v878_v46 }
 0x122   : > { %vm877_vm3 = vcmp.eq.f32.partialorder %v876_v36, 8.507059e+37 }
 0x123   : > { %v905_v32 = vmul.f32 %v904_v28, %v885_v62  ;;  %v894_v18 = vmul.f32 %v893_v48, %v885_v62  ;;  %v1168_v62 = vld [vmem:[%s1674_s7] ss:$0 sm:$0xff] }
 0x125   : > { %v1179_v39 = vpop.eup %1178  ;;  %v906_v19 = vadd.f32 1.0, %v905_v32  ;;  %v895_v13 = vadd.f32 1.1283791, %v894_v18 }
 0x126   : > { %v868_v41 = vmul.f32 %v1179_v39, %v866_v38  ;;  %vm873_vm0 = vweird.f32 %v1179_v39 }
 0x127   : > { %1180 = vrcp.f32 %v906_v19  ;;  %vm874_vm2 = vmor %vm872_vm1, %vm873_vm0  ;;  %v918_v14 = vand.u32 2147483648, %v906_v19  ;;  %v916_v56 = vand.u32 2147483647, %v906_v19  ;;  %vm912_vm5 = vweird.f32 %v906_v19 }
 0x128   : > { %v869_v44 = vsub.f32 1.0, %v868_v41  ;;  %v896_v58 = vmul.f32 %v895_v13, %v1615_v59 }
 0x129   : > { %v919_v57 = vor.u32 1.1754944e-38, %v918_v14  ;;  %vm917_vm7 = vcmp.eq.f32.partialorder %v916_v56, 8.507059e+37 }
 0x12a   : > { %v870_v47 = vmul.f32 %v1179_v39, %v869_v44 }
 0x12c   : > { %v871_v49 = vadd.f32 %v1179_v39, %v870_v47 }
 0x12d   : > { %v1181_v50 = vpop.eup %1180 }
 0x12e   : > { %v875_v31 = vsel %vm874_vm2, %v1179_v39, %v871_v49  ;;  %v908_v12 = vmul.f32 %v1181_v50, %v906_v19  ;;  %vm913_vm4 = vweird.f32 %v1181_v50 }
 0x12f   : > { %v880_v8 = vsel %vm877_vm3, %v879_v20, %v875_v31  ;;  %vm914_vm6 = vmor %vm912_vm5, %vm913_vm4 }
 0x130   : > { %v881_v52 = vmul.f32 %v880_v8, %v856_v51  ;;  %v909_v9 = vsub.f32 1.0, %v908_v12 }
 0x132   : > { %v1099_v54 = vclamps-f32 %v881_v52, 1.0  ;;  %v910_v55 = vmul.f32 %v1181_v50, %v909_v9 }
 0x134   : > { %v911_v11 = vadd.f32 %v1181_v50, %v910_v55  ;;  %v924_v10 = vadd.f32 1.0, %v1099_v54 }
 0x136   : > { %v915_v60 = vsel %vm914_vm6, %v1181_v50, %v911_v11  ;;  %v926_v22 = vmul.f32 %v924_v10, %v840_v61 }
 0x137   : > { %v920_v43 = vsel %vm917_vm7, %v919_v57, %v915_v60 }
 0x138   : > { %v921_v21 = vmul.f32 %v920_v43, %v896_v58  ;;  %v932_v59 = vmul.f32 %v1168_v62, %v926_v22 }
 0x13a   : > { %v1100_v63 = vclamps-f32 %v921_v21, 1.0  ;;  %v938_v16 = vadd.f32 %v1169_v53, %v932_v59 }
 0x13c   : > { %v925_v1 = vadd.f32 1.0, %v1100_v63 }
 0x13e   : > { %v927_v24 = vmul.f32 %v925_v1, %v841_v0 }
 0x140   : > { %v933_v2 = vmul.f32 %v1168_v62, %v927_v24 }
 0x142   : > { %v939_v3 = vadd.f32 %v1169_v53, %v933_v2 }
 0x144   : > { %v944_v4 = vadd.f32 %v939_v3, %v938_v16  ;;  %v1119_v35 = vpack.c.bf16 %v939_v3, %v938_v16 }
 0x146   : > { %v945_v34 = vrot.slane %v944_v4, 4  ;;  %1120 = vst [vmem:[%s353_s0] sm:$0xff] %v1119_v35  }
 0x147   : > { %1209 = shalt.err (!%p1206_p3)
}
 0x148   : > { %s1247_s0 = smov 64   ;;  %s1248_s27 = smov 4   ;;  %v946_v5 = vadd.f32 %v945_v34, %v944_v4 }
 0x149   : > { %1121 = dma.vmem_to_hbm [thread:$0]  (%p1342_p5), %s970_s28, 128, %s972_s17, %s954_s30, %s1247_s0, %s1247_s0, %s1248_s27  }
 0x14a   : > { %v947_v6 = vrot.slane %v946_v5, 2  ;;  %s366_s25 = scalar_lea.vmem %s1677_s10, %s1360_s29 }
 0x14c   : > { %v948_v37 = vadd.f32 %v947_v6, %v946_v5 }
 0x14e   : > { %v949_v7 = vrot.slane %v948_v37, 1 }
 0x150   : > { %v950_v29 = vadd.f32 %v949_v7, %v948_v37 }
 0x152   : > { %v951_v15 = vmul.f32 0.0625, %v950_v29 }
 0x154   : > { %952 = vst [vmem:[%s366_s25] sm:$0x1] %v951_v15 }
 0x155 PF: > { %p1127_p4 = scmp.ge.s32.totalorder %s1244_s16, 2  ;;  %s989_s11 = sand.u32 1, %s1232_s13  }
 0x156   : > { %s990_s23 = scalar_lea.sflag [#allocation5], %s989_s11 }
 0x157   : > { %p1124_p7 = pnand %p1127_p4, %p1346_p6 }
 0x159   : > { %p1125_p5 = pneg %p1124_p7 }
 0x15b   : > { %1227 = dma.done.wait (%p1125_p5), %s990_s23, 128  }
 0x15c   : > { %1229 = vsyncadd (%p1125_p5), %s990_s23, 4294967168  ;;  %p21_p8 = scmp.ge.s32.totalorder %s1329_s19, 4   ;;  %s1692_s13 = smov %s1236_s14 }
 0x15d   : > { %s1693_s14 = smov %s1240_s15  ;;  %s1694_s15 = smov %s1340_s22 }
 0x15e   : > { %s1695_s16 = smov %s1329_s19  ;;  %23 = sbr.rel (!%p21_p8) target bundleno = 5 (0x5), region = 104 }
 0x163   :  { %1002 = vsyncpa [#allocation5], 1 }
 0x164   :  { %1004 = vsyncpa [#allocation5 + $0x1], 1 }

</bundles_post_ra>
